<compile_context>
chip_gen: v6e
topology: v6e:2x2x1
jax: 0.10.0
libtpu: 0.0.40
codegen_flags: <defaults>
</compile_context>

<pallas_src>
import jax
import jax.numpy as jnp
from jax import lax
from jax.experimental import pallas as pl
from jax.experimental.pallas import tpu as pltpu


def _round_up(n, m):
    return ((n + m - 1) // m) * m


def _pick_time_block(s, cap=16):
    """Largest divisor of s that is <= cap (static unroll inside the kernel)."""
    t = min(s, cap)
    while s % t != 0:
        t -= 1
    return t


def _pick_batch_tile(bp, cap=256):
    """Largest multiple-of-8 divisor of bp that is <= cap.

    cap=256 fills MXU rows (v6e/v7x 256-row MXU; 2 passes on v5e's 128-row
    MXU) and for bp >= 512 automatically gives >= 2 blocks on the parallel
    batch axis (v7x megacore).  For small bp a single block is preferred:
    extra batch blocks just multiply the serial time sweeps on 1-TC chips.
    """
    bt = min(bp, cap)
    bt -= bt % 8
    while bt >= 8 and bp % bt != 0:
        bt -= 8
    return bt if bt >= 8 else min(bp, cap)


# ---------------------------------------------------------------------------
# Fused kernel: input projection + leaky-tanh recurrence + fc readout.
#   grid = (Bp // Bt, S // T)   axis0 batch ("parallel"), axis1 time ("arbitrary")
#   hidden state lives in a VMEM scratch buffer and is carried across the
#   sequential time axis; it is reset at the first time block of each batch
#   block (matches CTRNN.init_hidden).
# ---------------------------------------------------------------------------
def _make_fused_kernel(alpha: float, t_block: int):
    leaky = (alpha != 1.0)  # static python branch (alpha==1 when dt is None)

    def kernel(x_ref, w_in_ref, b_inh_ref, w_h_ref, w_fc_ref, b_fc_ref,
               out_ref, rnn_ref, h_scratch):
        @pl.when(pl.program_id(1) == 0)
        def _():
            h_scratch[...] = jnp.zeros_like(h_scratch)

        w_in = w_in_ref[...]
        b_inh = b_inh_ref[...]       # b_in + b_h, folded once in the wrapper
        w_h = w_h_ref[...]
        w_fc = w_fc_ref[...]
        b_fc = b_fc_ref[...]

        h = h_scratch[...]                              # (Bt, Hp)
        # Static unroll with constant indices (T <= 16).  The x @ W_in and
        # h @ W_fc matmuls have no cross-step dependency, so the scheduler
        # overlaps them with the serial h @ W_h -> tanh chain.
        for s in range(t_block):
            xproj = jnp.dot(x_ref[s], w_in,
                            preferred_element_type=jnp.float32) + b_inh
            h_new = jnp.tanh(
                xproj + jnp.dot(h, w_h, preferred_element_type=jnp.float32))
            if leaky:
                h = h * (1.0 - alpha) + h_new * alpha
            else:
                h = h_new
            rnn_ref[s] = h
            out_ref[s] = jnp.tanh(
                jnp.dot(h, w_fc, preferred_element_type=jnp.float32) + b_fc)
        h_scratch[...] = h                              # carry across time blocks

    return kernel


# ---------------------------------------------------------------------------
# Wrapper
# ---------------------------------------------------------------------------
def pad_params(params):
    """Pad parameters ONCE (hoisted out of the per-call forward path)."""
    w_in, b_in, w_h, b_h, w_fc, b_fc = params
    I, H = w_in.shape
    O = w_fc.shape[1]
    Ip, Hp, Op = _round_up(I, 128), _round_up(H, 128), _round_up(O, 128)

    w_in_p = jnp.zeros((Ip, Hp), jnp.float32).at[:I, :H].set(w_in)
    w_h_p = jnp.zeros((Hp, Hp), jnp.float32).at[:H, :H].set(w_h)
    w_fc_p = jnp.zeros((Hp, Op), jnp.float32).at[:H, :O].set(w_fc)
    # Fold b_h into the input-projection bias (one less add on the serial path).
    b_inh = b_in.reshape(1, -1) + b_h.reshape(1, -1)
    b_inh_p = jnp.zeros((1, Hp), jnp.float32).at[:, :H].set(b_inh)
    b_fc_p = jnp.zeros((1, Op), jnp.float32).at[:, :O].set(b_fc.reshape(1, -1))

    return (w_in_p, b_inh_p, w_h_p, w_fc_p, b_fc_p), (I, H, O)


def forward_padded(x, padded_params, dims, alpha=1.0):
    """x: (S, B, I) f32. Returns (out (S,B,O), rnn_output (S,B,H))."""
    # alpha must be a static python float (the leaky branch is resolved at
    # trace time); float() raises loudly if a traced value is passed.
    alpha = float(alpha)

    w_in_p, b_inh_p, w_h_p, w_fc_p, b_fc_p = padded_params
    I, H, O = dims
    S, B, Ix = x.shape
    assert Ix == I, "input feature size mismatch"

    Ip, Hp = w_in_p.shape
    Op = w_fc_p.shape[1]
    Bp = _round_up(B, 8)

    # Only the activations are padded per call.
    xp = jnp.zeros((S, Bp, Ip), jnp.float32).at[:, :B, :I].set(x)

    T = _pick_time_block(S, cap=16)      # timesteps per grid step
    Bt = _pick_batch_tile(Bp, cap=256)   # batch rows per recurrence tile

    # --- explicit VMEM budget (resident weights + blocks are double-buffered)
    f32 = 4
    weight_bytes = f32 * (Ip * Hp + Hp * Hp + Hp * Op + Hp + Op)
    block_bytes = f32 * (T * Bt * (Ip + Hp + Op))
    scratch_bytes = f32 * Bt * Hp
    vmem_needed = 2 * (weight_bytes + block_bytes) + scratch_bytes
    vmem_limit = int(min(max(vmem_needed + (8 << 20), 32 << 20), 128 << 20))

    out_p, rnn_p = pl.pallas_call(
        _make_fused_kernel(alpha, T),
        out_shape=(
            jax.ShapeDtypeStruct((S, Bp, Op), jnp.float32),
            jax.ShapeDtypeStruct((S, Bp, Hp), jnp.float32),
        ),
        grid_spec=pltpu.PrefetchScalarGridSpec(
            num_scalar_prefetch=0,
            grid=(Bp // Bt, S // T),
            in_specs=[
                pl.BlockSpec((T, Bt, Ip), lambda b, t: (t, b, 0)),  # x block
                pl.BlockSpec((Ip, Hp), lambda b, t: (0, 0)),        # W_in (resident)
                pl.BlockSpec((1, Hp), lambda b, t: (0, 0)),         # b_in + b_h
                pl.BlockSpec((Hp, Hp), lambda b, t: (0, 0)),        # W_h  (resident)
                pl.BlockSpec((Hp, Op), lambda b, t: (0, 0)),        # W_fc (resident)
                pl.BlockSpec((1, Op), lambda b, t: (0, 0)),         # b_fc
            ],
            out_specs=[
                pl.BlockSpec((T, Bt, Op), lambda b, t: (t, b, 0)),  # out
                pl.BlockSpec((T, Bt, Hp), lambda b, t: (t, b, 0)),  # rnn_output
            ],
            scratch_shapes=[pltpu.VMEM((Bt, Hp), jnp.float32)],     # hidden state
        ),
        compiler_params=pltpu.CompilerParams(
            dimension_semantics=("parallel", "arbitrary"),
            vmem_limit_bytes=vmem_limit),
    )(xp, w_in_p, b_inh_p, w_h_p, w_fc_p, b_fc_p)

    return out_p[:, :B, :O], rnn_p[:, :B, :H]


def rnn_net_forward(x, params, alpha=1.0):
    """Convenience wrapper: pads params and runs the fused forward."""
    padded, dims = pad_params(params)
    return forward_padded(x, padded, dims, alpha)


# ---------------------------------------------------------------------------
# Pure-JAX reference (matches the PyTorch semantics) + init
# ---------------------------------------------------------------------------
def reference_forward(x, params, alpha=1.0):
    w_in, b_in, w_h, b_h, w_fc, b_fc = params
    S, B, I = x.shape
    H = w_in.shape[1]
    h0 = jnp.zeros((B, H), jnp.float32)

    def step(h, x_t):
        h_new = jnp.tanh(x_t @ w_in + b_in + h @ w_h + b_h)
        h = h * (1.0 - alpha) + h_new * alpha
        return h, h

    _, rnn_out = lax.scan(step, h0, x)
    out = jnp.tanh(rnn_out @ w_fc + b_fc)
    return out, rnn_out


def init_params(key, input_size, hidden_size, output_size):
    """Deterministic synthetic init (uniform, Linear-like fan-in scaling)."""
    ks = jax.random.split(key, 6)

    def uniform(k, shape, fan_in):
        bound = 1.0 / jnp.sqrt(fan_in)
        return jax.random.uniform(k, shape, jnp.float32, -bound, bound)

    w_in = uniform(ks[0], (input_size, hidden_size), input_size)   # (in, out)
    b_in = uniform(ks[1], (1, hidden_size), input_size)
    w_h = uniform(ks[2], (hidden_size, hidden_size), hidden_size)
    b_h = uniform(ks[3], (1, hidden_size), hidden_size)
    w_fc = uniform(ks[4], (hidden_size, output_size), hidden_size)
    b_fc = uniform(ks[5], (1, output_size), hidden_size)
    return (w_in, b_in, w_h, b_h, w_fc, b_fc)


if __name__ == "__main__":
    seq_len, batch, input_size, hidden_size, output_size = 8, 4, 16, 32, 8
    alpha = 1.0  # dt=None -> alpha = 1 (as in CTRNN.__init__)

    key = jax.random.PRNGKey(0)
    k_x, k_p = jax.random.split(key)
    x = jax.random.normal(k_x, (seq_len, batch, input_size), jnp.float32)
    params = init_params(k_p, input_size, hidden_size, output_size)

    # Pad the parameters once at init (hoisted out of the per-call path),
    # then jit the forward so only the activation padding happens per call.
    padded, dims = pad_params(params)
    fwd = jax.jit(lambda xx: forward_padded(xx, padded, dims, alpha))

    out, rnn_out = fwd(x)
    out = jax.block_until_ready(out)
    rnn_out = jax.block_until_ready(rnn_out)

    ref_out, ref_rnn = reference_forward(x, params, alpha=alpha)
    assert out.shape == (seq_len, batch, output_size)
    assert rnn_out.shape == (seq_len, batch, hidden_size)
    assert jnp.allclose(out, ref_out, atol=2e-5, rtol=2e-5)
    assert jnp.allclose(rnn_out, ref_rnn, atol=2e-5, rtol=2e-5)

    print("KERNEL_OK")
</pallas_src>

<mosaic_0001>
module attributes {stable_mosaic.version = 11 : i64} {
  func.func @kernel(%arg0: i32, %arg1: i32, %arg2: memref<8x8x128xf32, #tpu.memory_space<vmem>>, %arg3: memref<128x128xf32, #tpu.memory_space<vmem>>, %arg4: memref<1x128xf32, #tpu.memory_space<vmem>>, %arg5: memref<128x128xf32, #tpu.memory_space<vmem>>, %arg6: memref<128x128xf32, #tpu.memory_space<vmem>>, %arg7: memref<1x128xf32, #tpu.memory_space<vmem>>, %arg8: memref<8x8x128xf32, #tpu.memory_space<vmem>>, %arg9: memref<8x8x128xf32, #tpu.memory_space<vmem>>, %arg10: memref<8x128xf32, #tpu.memory_space<vmem>>) attributes {dimension_semantics = [#tpu.dimension_semantics<parallel>, #tpu.dimension_semantics<arbitrary>], iteration_bounds = array<i64: 1, 1>, scalar_prefetch = 0 : i64, scratch_operands = 1 : i64, tpu.core_type = #tpu.core_type<tc>, window_params = [{transform_indices = @transform_0, window_bounds = array<i64: 8, 8, 128>}, {pipeline_mode = #tpu.pipeline_mode<synchronous>, transform_indices = @transform_1, window_bounds = array<i64: 128, 128>}, {pipeline_mode = #tpu.pipeline_mode<synchronous>, transform_indices = @transform_2, window_bounds = array<i64: 1, 128>}, {pipeline_mode = #tpu.pipeline_mode<synchronous>, transform_indices = @transform_3, window_bounds = array<i64: 128, 128>}, {pipeline_mode = #tpu.pipeline_mode<synchronous>, transform_indices = @transform_4, window_bounds = array<i64: 128, 128>}, {pipeline_mode = #tpu.pipeline_mode<synchronous>, transform_indices = @transform_5, window_bounds = array<i64: 1, 128>}, {transform_indices = @transform_6, window_bounds = array<i64: 8, 8, 128>}, {transform_indices = @transform_7, window_bounds = array<i64: 8, 8, 128>}]} {
    %c0_i32 = arith.constant 0 : i32
    %0 = arith.cmpi eq, %arg1, %c0_i32 : i32
    %1 = arith.extui %0 : i1 to i32
    %c0_i32_0 = arith.constant 0 : i32
    %2 = arith.cmpi ne, %1, %c0_i32_0 : i32
    scf.if %2 {
      %cst_102 = arith.constant 0.000000e+00 : f32
      %154 = vector.broadcast %cst_102 : f32 to vector<8x128xf32>
      %c0_103 = arith.constant 0 : index
      %c0_104 = arith.constant 0 : index
      %155 = vector.load %arg10[%c0_103, %c0_104] : memref<8x128xf32, #tpu.memory_space<vmem>>, vector<8x128xf32>
      tpu.vector_store %arg10[%c0_103, %c0_104], %154 {strides = array<i32>} : memref<8x128xf32, #tpu.memory_space<vmem>>, vector<8x128xf32>,
    } else {
    }
    %c0 = arith.constant 0 : index
    %c0_1 = arith.constant 0 : index
    %3 = vector.load %arg3[%c0, %c0_1] : memref<128x128xf32, #tpu.memory_space<vmem>>, vector<128x128xf32>
    %c0_2 = arith.constant 0 : index
    %c0_3 = arith.constant 0 : index
    %4 = vector.load %arg4[%c0_2, %c0_3] : memref<1x128xf32, #tpu.memory_space<vmem>>, vector<1x128xf32>
    %c0_4 = arith.constant 0 : index
    %c0_5 = arith.constant 0 : index
    %5 = vector.load %arg5[%c0_4, %c0_5] : memref<128x128xf32, #tpu.memory_space<vmem>>, vector<128x128xf32>
    %c0_6 = arith.constant 0 : index
    %c0_7 = arith.constant 0 : index
    %6 = vector.load %arg6[%c0_6, %c0_7] : memref<128x128xf32, #tpu.memory_space<vmem>>, vector<128x128xf32>
    %c0_8 = arith.constant 0 : index
    %c0_9 = arith.constant 0 : index
    %7 = vector.load %arg7[%c0_8, %c0_9] : memref<1x128xf32, #tpu.memory_space<vmem>>, vector<1x128xf32>
    %c0_10 = arith.constant 0 : index
    %c0_11 = arith.constant 0 : index
    %8 = vector.load %arg10[%c0_10, %c0_11] : memref<8x128xf32, #tpu.memory_space<vmem>>, vector<8x128xf32>
    %c0_12 = arith.constant 0 : index
    %c0_13 = arith.constant 0 : index
    %c0_14 = arith.constant 0 : index
    %9 = vector.load %arg2[%c0_12, %c0_13, %c0_14] : memref<8x8x128xf32, #tpu.memory_space<vmem>>, vector<1x8x128xf32>
    %10 = vector.shape_cast %9 : vector<1x8x128xf32> to vector<8x128xf32>
    %cst = arith.constant dense<0.000000e+00> : vector<8x128xf32>
    %11 = tpu.matmul %10, %3, %cst {dimension_numbers = #tpu.dot_dimension_numbers<[1], [0], [0], [1], [0, 0, 1, 1], [], []>} : vector<8x128xf32>, vector<128x128xf32>, vector<8x128xf32> -> vector<8x128xf32>
    %12 = vector.broadcast %4 : vector<1x128xf32> to vector<8x128xf32>
    %13 = arith.addf %11, %12 : vector<8x128xf32>
    %cst_15 = arith.constant dense<0.000000e+00> : vector<8x128xf32>
    %14 = tpu.matmul %8, %5, %cst_15 {dimension_numbers = #tpu.dot_dimension_numbers<[1], [0], [0], [1], [0, 0, 1, 1], [], []>} : vector<8x128xf32>, vector<128x128xf32>, vector<8x128xf32> -> vector<8x128xf32>
    %15 = arith.addf %13, %14 : vector<8x128xf32>
    %16 = math.tanh %15 : vector<8x128xf32>
    %c0_16 = arith.constant 0 : index
    %c0_17 = arith.constant 0 : index
    %c0_18 = arith.constant 0 : index
    %17 = vector.load %arg9[%c0_16, %c0_17, %c0_18] : memref<8x8x128xf32, #tpu.memory_space<vmem>>, vector<1x8x128xf32>
    %18 = vector.shape_cast %17 : vector<1x8x128xf32> to vector<8x128xf32>
    %19 = vector.shape_cast %16 : vector<8x128xf32> to vector<1x8x128xf32>
    tpu.vector_store %arg9[%c0_16, %c0_17, %c0_18], %19 {strides = array<i32>} : memref<8x8x128xf32, #tpu.memory_space<vmem>>, vector<1x8x128xf32>,
    %cst_19 = arith.constant dense<0.000000e+00> : vector<8x128xf32>
    %20 = tpu.matmul %16, %6, %cst_19 {dimension_numbers = #tpu.dot_dimension_numbers<[1], [0], [0], [1], [0, 0, 1, 1], [], []>} : vector<8x128xf32>, vector<128x128xf32>, vector<8x128xf32> -> vector<8x128xf32>
    %21 = vector.broadcast %7 : vector<1x128xf32> to vector<8x128xf32>
    %22 = arith.addf %20, %21 : vector<8x128xf32>
    %23 = math.tanh %22 : vector<8x128xf32>
    %c0_20 = arith.constant 0 : index
    %c0_21 = arith.constant 0 : index
    %c0_22 = arith.constant 0 : index
    %24 = vector.load %arg8[%c0_20, %c0_21, %c0_22] : memref<8x8x128xf32, #tpu.memory_space<vmem>>, vector<1x8x128xf32>
    %25 = vector.shape_cast %24 : vector<1x8x128xf32> to vector<8x128xf32>
    %26 = vector.shape_cast %23 : vector<8x128xf32> to vector<1x8x128xf32>
    tpu.vector_store %arg8[%c0_20, %c0_21, %c0_22], %26 {strides = array<i32>} : memref<8x8x128xf32, #tpu.memory_space<vmem>>, vector<1x8x128xf32>,
    %c1 = arith.constant 1 : index
    %c0_23 = arith.constant 0 : index
    %c0_24 = arith.constant 0 : index
    %27 = vector.load %arg2[%c1, %c0_23, %c0_24] : memref<8x8x128xf32, #tpu.memory_space<vmem>>, vector<1x8x128xf32>
    %28 = vector.shape_cast %27 : vector<1x8x128xf32> to vector<8x128xf32>
    %cst_25 = arith.constant dense<0.000000e+00> : vector<8x128xf32>
    %29 = tpu.matmul %28, %3, %cst_25 {dimension_numbers = #tpu.dot_dimension_numbers<[1], [0], [0], [1], [0, 0, 1, 1], [], []>} : vector<8x128xf32>, vector<128x128xf32>, vector<8x128xf32> -> vector<8x128xf32>
    %30 = vector.broadcast %4 : vector<1x128xf32> to vector<8x128xf32>
    %31 = arith.addf %29, %30 : vector<8x128xf32>
    %cst_26 = arith.constant dense<0.000000e+00> : vector<8x128xf32>
    %32 = tpu.matmul %16, %5, %cst_26 {dimension_numbers = #tpu.dot_dimension_numbers<[1], [0], [0], [1], [0, 0, 1, 1], [], []>} : vector<8x128xf32>, vector<128x128xf32>, vector<8x128xf32> -> vector<8x128xf32>
    %33 = arith.addf %31, %32 : vector<8x128xf32>
    %34 = math.tanh %33 : vector<8x128xf32>
    %c1_27 = arith.constant 1 : index
    %c0_28 = arith.constant 0 : index
    %c0_29 = arith.constant 0 : index
    %35 = vector.load %arg9[%c1_27, %c0_28, %c0_29] : memref<8x8x128xf32, #tpu.memory_space<vmem>>, vector<1x8x128xf32>
    %36 = vector.shape_cast %35 : vector<1x8x128xf32> to vector<8x128xf32>
    %37 = vector.shape_cast %34 : vector<8x128xf32> to vector<1x8x128xf32>
    tpu.vector_store %arg9[%c1_27, %c0_28, %c0_29], %37 {strides = array<i32>} : memref<8x8x128xf32, #tpu.memory_space<vmem>>, vector<1x8x128xf32>,
    %cst_30 = arith.constant dense<0.000000e+00> : vector<8x128xf32>
    %38 = tpu.matmul %34, %6, %cst_30 {dimension_numbers = #tpu.dot_dimension_numbers<[1], [0], [0], [1], [0, 0, 1, 1], [], []>} : vector<8x128xf32>, vector<128x128xf32>, vector<8x128xf32> -> vector<8x128xf32>
    %39 = vector.broadcast %7 : vector<1x128xf32> to vector<8x128xf32>
    %40 = arith.addf %38, %39 : vector<8x128xf32>
    %41 = math.tanh %40 : vector<8x128xf32>
    %c1_31 = arith.constant 1 : index
    %c0_32 = arith.constant 0 : index
    %c0_33 = arith.constant 0 : index
    %42 = vector.load %arg8[%c1_31, %c0_32, %c0_33] : memref<8x8x128xf32, #tpu.memory_space<vmem>>, vector<1x8x128xf32>
    %43 = vector.shape_cast %42 : vector<1x8x128xf32> to vector<8x128xf32>
    %44 = vector.shape_cast %41 : vector<8x128xf32> to vector<1x8x128xf32>
    tpu.vector_store %arg8[%c1_31, %c0_32, %c0_33], %44 {strides = array<i32>} : memref<8x8x128xf32, #tpu.memory_space<vmem>>, vector<1x8x128xf32>,
    %c2 = arith.constant 2 : index
    %c0_34 = arith.constant 0 : index
    %c0_35 = arith.constant 0 : index
    %45 = vector.load %arg2[%c2, %c0_34, %c0_35] : memref<8x8x128xf32, #tpu.memory_space<vmem>>, vector<1x8x128xf32>
    %46 = vector.shape_cast %45 : vector<1x8x128xf32> to vector<8x128xf32>
    %cst_36 = arith.constant dense<0.000000e+00> : vector<8x128xf32>
    %47 = tpu.matmul %46, %3, %cst_36 {dimension_numbers = #tpu.dot_dimension_numbers<[1], [0], [0], [1], [0, 0, 1, 1], [], []>} : vector<8x128xf32>, vector<128x128xf32>, vector<8x128xf32> -> vector<8x128xf32>
    %48 = vector.broadcast %4 : vector<1x128xf32> to vector<8x128xf32>
    %49 = arith.addf %47, %48 : vector<8x128xf32>
    %cst_37 = arith.constant dense<0.000000e+00> : vector<8x128xf32>
    %50 = tpu.matmul %34, %5, %cst_37 {dimension_numbers = #tpu.dot_dimension_numbers<[1], [0], [0], [1], [0, 0, 1, 1], [], []>} : vector<8x128xf32>, vector<128x128xf32>, vector<8x128xf32> -> vector<8x128xf32>
    %51 = arith.addf %49, %50 : vector<8x128xf32>
    %52 = math.tanh %51 : vector<8x128xf32>
    %c2_38 = arith.constant 2 : index
    %c0_39 = arith.constant 0 : index
    %c0_40 = arith.constant 0 : index
    %53 = vector.load %arg9[%c2_38, %c0_39, %c0_40] : memref<8x8x128xf32, #tpu.memory_space<vmem>>, vector<1x8x128xf32>
    %54 = vector.shape_cast %53 : vector<1x8x128xf32> to vector<8x128xf32>
    %55 = vector.shape_cast %52 : vector<8x128xf32> to vector<1x8x128xf32>
    tpu.vector_store %arg9[%c2_38, %c0_39, %c0_40], %55 {strides = array<i32>} : memref<8x8x128xf32, #tpu.memory_space<vmem>>, vector<1x8x128xf32>,
    %cst_41 = arith.constant dense<0.000000e+00> : vector<8x128xf32>
    %56 = tpu.matmul %52, %6, %cst_41 {dimension_numbers = #tpu.dot_dimension_numbers<[1], [0], [0], [1], [0, 0, 1, 1], [], []>} : vector<8x128xf32>, vector<128x128xf32>, vector<8x128xf32> -> vector<8x128xf32>
    %57 = vector.broadcast %7 : vector<1x128xf32> to vector<8x128xf32>
    %58 = arith.addf %56, %57 : vector<8x128xf32>
    %59 = math.tanh %58 : vector<8x128xf32>
    %c2_42 = arith.constant 2 : index
    %c0_43 = arith.constant 0 : index
    %c0_44 = arith.constant 0 : index
    %60 = vector.load %arg8[%c2_42, %c0_43, %c0_44] : memref<8x8x128xf32, #tpu.memory_space<vmem>>, vector<1x8x128xf32>
    %61 = vector.shape_cast %60 : vector<1x8x128xf32> to vector<8x128xf32>
    %62 = vector.shape_cast %59 : vector<8x128xf32> to vector<1x8x128xf32>
    tpu.vector_store %arg8[%c2_42, %c0_43, %c0_44], %62 {strides = array<i32>} : memref<8x8x128xf32, #tpu.memory_space<vmem>>, vector<1x8x128xf32>,
    %c3 = arith.constant 3 : index
    %c0_45 = arith.constant 0 : index
    %c0_46 = arith.constant 0 : index
    %63 = vector.load %arg2[%c3, %c0_45, %c0_46] : memref<8x8x128xf32, #tpu.memory_space<vmem>>, vector<1x8x128xf32>
    %64 = vector.shape_cast %63 : vector<1x8x128xf32> to vector<8x128xf32>
    %cst_47 = arith.constant dense<0.000000e+00> : vector<8x128xf32>
    %65 = tpu.matmul %64, %3, %cst_47 {dimension_numbers = #tpu.dot_dimension_numbers<[1], [0], [0], [1], [0, 0, 1, 1], [], []>} : vector<8x128xf32>, vector<128x128xf32>, vector<8x128xf32> -> vector<8x128xf32>
    %66 = vector.broadcast %4 : vector<1x128xf32> to vector<8x128xf32>
    %67 = arith.addf %65, %66 : vector<8x128xf32>
    %cst_48 = arith.constant dense<0.000000e+00> : vector<8x128xf32>
    %68 = tpu.matmul %52, %5, %cst_48 {dimension_numbers = #tpu.dot_dimension_numbers<[1], [0], [0], [1], [0, 0, 1, 1], [], []>} : vector<8x128xf32>, vector<128x128xf32>, vector<8x128xf32> -> vector<8x128xf32>
    %69 = arith.addf %67, %68 : vector<8x128xf32>
    %70 = math.tanh %69 : vector<8x128xf32>
    %c3_49 = arith.constant 3 : index
    %c0_50 = arith.constant 0 : index
    %c0_51 = arith.constant 0 : index
    %71 = vector.load %arg9[%c3_49, %c0_50, %c0_51] : memref<8x8x128xf32, #tpu.memory_space<vmem>>, vector<1x8x128xf32>
    %72 = vector.shape_cast %71 : vector<1x8x128xf32> to vector<8x128xf32>
    %73 = vector.shape_cast %70 : vector<8x128xf32> to vector<1x8x128xf32>
    tpu.vector_store %arg9[%c3_49, %c0_50, %c0_51], %73 {strides = array<i32>} : memref<8x8x128xf32, #tpu.memory_space<vmem>>, vector<1x8x128xf32>,
    %cst_52 = arith.constant dense<0.000000e+00> : vector<8x128xf32>
    %74 = tpu.matmul %70, %6, %cst_52 {dimension_numbers = #tpu.dot_dimension_numbers<[1], [0], [0], [1], [0, 0, 1, 1], [], []>} : vector<8x128xf32>, vector<128x128xf32>, vector<8x128xf32> -> vector<8x128xf32>
    %75 = vector.broadcast %7 : vector<1x128xf32> to vector<8x128xf32>
    %76 = arith.addf %74, %75 : vector<8x128xf32>
    %77 = math.tanh %76 : vector<8x128xf32>
    %c3_53 = arith.constant 3 : index
    %c0_54 = arith.constant 0 : index
    %c0_55 = arith.constant 0 : index
    %78 = vector.load %arg8[%c3_53, %c0_54, %c0_55] : memref<8x8x128xf32, #tpu.memory_space<vmem>>, vector<1x8x128xf32>
    %79 = vector.shape_cast %78 : vector<1x8x128xf32> to vector<8x128xf32>
    %80 = vector.shape_cast %77 : vector<8x128xf32> to vector<1x8x128xf32>
    tpu.vector_store %arg8[%c3_53, %c0_54, %c0_55], %80 {strides = array<i32>} : memref<8x8x128xf32, #tpu.memory_space<vmem>>, vector<1x8x128xf32>,
    %c4 = arith.constant 4 : index
    %c0_56 = arith.constant 0 : index
    %c0_57 = arith.constant 0 : index
    %81 = vector.load %arg2[%c4, %c0_56, %c0_57] : memref<8x8x128xf32, #tpu.memory_space<vmem>>, vector<1x8x128xf32>
    %82 = vector.shape_cast %81 : vector<1x8x128xf32> to vector<8x128xf32>
    %cst_58 = arith.constant dense<0.000000e+00> : vector<8x128xf32>
    %83 = tpu.matmul %82, %3, %cst_58 {dimension_numbers = #tpu.dot_dimension_numbers<[1], [0], [0], [1], [0, 0, 1, 1], [], []>} : vector<8x128xf32>, vector<128x128xf32>, vector<8x128xf32> -> vector<8x128xf32>
    %84 = vector.broadcast %4 : vector<1x128xf32> to vector<8x128xf32>
    %85 = arith.addf %83, %84 : vector<8x128xf32>
    %cst_59 = arith.constant dense<0.000000e+00> : vector<8x128xf32>
    %86 = tpu.matmul %70, %5, %cst_59 {dimension_numbers = #tpu.dot_dimension_numbers<[1], [0], [0], [1], [0, 0, 1, 1], [], []>} : vector<8x128xf32>, vector<128x128xf32>, vector<8x128xf32> -> vector<8x128xf32>
    %87 = arith.addf %85, %86 : vector<8x128xf32>
    %88 = math.tanh %87 : vector<8x128xf32>
    %c4_60 = arith.constant 4 : index
    %c0_61 = arith.constant 0 : index
    %c0_62 = arith.constant 0 : index
    %89 = vector.load %arg9[%c4_60, %c0_61, %c0_62] : memref<8x8x128xf32, #tpu.memory_space<vmem>>, vector<1x8x128xf32>
    %90 = vector.shape_cast %89 : vector<1x8x128xf32> to vector<8x128xf32>
    %91 = vector.shape_cast %88 : vector<8x128xf32> to vector<1x8x128xf32>
    tpu.vector_store %arg9[%c4_60, %c0_61, %c0_62], %91 {strides = array<i32>} : memref<8x8x128xf32, #tpu.memory_space<vmem>>, vector<1x8x128xf32>,
    %cst_63 = arith.constant dense<0.000000e+00> : vector<8x128xf32>
    %92 = tpu.matmul %88, %6, %cst_63 {dimension_numbers = #tpu.dot_dimension_numbers<[1], [0], [0], [1], [0, 0, 1, 1], [], []>} : vector<8x128xf32>, vector<128x128xf32>, vector<8x128xf32> -> vector<8x128xf32>
    %93 = vector.broadcast %7 : vector<1x128xf32> to vector<8x128xf32>
    %94 = arith.addf %92, %93 : vector<8x128xf32>
    %95 = math.tanh %94 : vector<8x128xf32>
    %c4_64 = arith.constant 4 : index
    %c0_65 = arith.constant 0 : index
    %c0_66 = arith.constant 0 : index
    %96 = vector.load %arg8[%c4_64, %c0_65, %c0_66] : memref<8x8x128xf32, #tpu.memory_space<vmem>>, vector<1x8x128xf32>
    %97 = vector.shape_cast %96 : vector<1x8x128xf32> to vector<8x128xf32>
    %98 = vector.shape_cast %95 : vector<8x128xf32> to vector<1x8x128xf32>
    tpu.vector_store %arg8[%c4_64, %c0_65, %c0_66], %98 {strides = array<i32>} : memref<8x8x128xf32, #tpu.memory_space<vmem>>, vector<1x8x128xf32>,
    %c5 = arith.constant 5 : index
    %c0_67 = arith.constant 0 : index
    %c0_68 = arith.constant 0 : index
    %99 = vector.load %arg2[%c5, %c0_67, %c0_68] : memref<8x8x128xf32, #tpu.memory_space<vmem>>, vector<1x8x128xf32>
    %100 = vector.shape_cast %99 : vector<1x8x128xf32> to vector<8x128xf32>
    %cst_69 = arith.constant dense<0.000000e+00> : vector<8x128xf32>
    %101 = tpu.matmul %100, %3, %cst_69 {dimension_numbers = #tpu.dot_dimension_numbers<[1], [0], [0], [1], [0, 0, 1, 1], [], []>} : vector<8x128xf32>, vector<128x128xf32>, vector<8x128xf32> -> vector<8x128xf32>
    %102 = vector.broadcast %4 : vector<1x128xf32> to vector<8x128xf32>
    %103 = arith.addf %101, %102 : vector<8x128xf32>
    %cst_70 = arith.constant dense<0.000000e+00> : vector<8x128xf32>
    %104 = tpu.matmul %88, %5, %cst_70 {dimension_numbers = #tpu.dot_dimension_numbers<[1], [0], [0], [1], [0, 0, 1, 1], [], []>} : vector<8x128xf32>, vector<128x128xf32>, vector<8x128xf32> -> vector<8x128xf32>
    %105 = arith.addf %103, %104 : vector<8x128xf32>
    %106 = math.tanh %105 : vector<8x128xf32>
    %c5_71 = arith.constant 5 : index
    %c0_72 = arith.constant 0 : index
    %c0_73 = arith.constant 0 : index
    %107 = vector.load %arg9[%c5_71, %c0_72, %c0_73] : memref<8x8x128xf32, #tpu.memory_space<vmem>>, vector<1x8x128xf32>
    %108 = vector.shape_cast %107 : vector<1x8x128xf32> to vector<8x128xf32>
    %109 = vector.shape_cast %106 : vector<8x128xf32> to vector<1x8x128xf32>
    tpu.vector_store %arg9[%c5_71, %c0_72, %c0_73], %109 {strides = array<i32>} : memref<8x8x128xf32, #tpu.memory_space<vmem>>, vector<1x8x128xf32>,
    %cst_74 = arith.constant dense<0.000000e+00> : vector<8x128xf32>
    %110 = tpu.matmul %106, %6, %cst_74 {dimension_numbers = #tpu.dot_dimension_numbers<[1], [0], [0], [1], [0, 0, 1, 1], [], []>} : vector<8x128xf32>, vector<128x128xf32>, vector<8x128xf32> -> vector<8x128xf32>
    %111 = vector.broadcast %7 : vector<1x128xf32> to vector<8x128xf32>
    %112 = arith.addf %110, %111 : vector<8x128xf32>
    %113 = math.tanh %112 : vector<8x128xf32>
    %c5_75 = arith.constant 5 : index
    %c0_76 = arith.constant 0 : index
    %c0_77 = arith.constant 0 : index
    %114 = vector.load %arg8[%c5_75, %c0_76, %c0_77] : memref<8x8x128xf32, #tpu.memory_space<vmem>>, vector<1x8x128xf32>
    %115 = vector.shape_cast %114 : vector<1x8x128xf32> to vector<8x128xf32>
    %116 = vector.shape_cast %113 : vector<8x128xf32> to vector<1x8x128xf32>
    tpu.vector_store %arg8[%c5_75, %c0_76, %c0_77], %116 {strides = array<i32>} : memref<8x8x128xf32, #tpu.memory_space<vmem>>, vector<1x8x128xf32>,
    %c6 = arith.constant 6 : index
    %c0_78 = arith.constant 0 : index
    %c0_79 = arith.constant 0 : index
    %117 = vector.load %arg2[%c6, %c0_78, %c0_79] : memref<8x8x128xf32, #tpu.memory_space<vmem>>, vector<1x8x128xf32>
    %118 = vector.shape_cast %117 : vector<1x8x128xf32> to vector<8x128xf32>
    %cst_80 = arith.constant dense<0.000000e+00> : vector<8x128xf32>
    %119 = tpu.matmul %118, %3, %cst_80 {dimension_numbers = #tpu.dot_dimension_numbers<[1], [0], [0], [1], [0, 0, 1, 1], [], []>} : vector<8x128xf32>, vector<128x128xf32>, vector<8x128xf32> -> vector<8x128xf32>
    %120 = vector.broadcast %4 : vector<1x128xf32> to vector<8x128xf32>
    %121 = arith.addf %119, %120 : vector<8x128xf32>
    %cst_81 = arith.constant dense<0.000000e+00> : vector<8x128xf32>
    %122 = tpu.matmul %106, %5, %cst_81 {dimension_numbers = #tpu.dot_dimension_numbers<[1], [0], [0], [1], [0, 0, 1, 1], [], []>} : vector<8x128xf32>, vector<128x128xf32>, vector<8x128xf32> -> vector<8x128xf32>
    %123 = arith.addf %121, %122 : vector<8x128xf32>
    %124 = math.tanh %123 : vector<8x128xf32>
    %c6_82 = arith.constant 6 : index
    %c0_83 = arith.constant 0 : index
    %c0_84 = arith.constant 0 : index
    %125 = vector.load %arg9[%c6_82, %c0_83, %c0_84] : memref<8x8x128xf32, #tpu.memory_space<vmem>>, vector<1x8x128xf32>
    %126 = vector.shape_cast %125 : vector<1x8x128xf32> to vector<8x128xf32>
    %127 = vector.shape_cast %124 : vector<8x128xf32> to vector<1x8x128xf32>
    tpu.vector_store %arg9[%c6_82, %c0_83, %c0_84], %127 {strides = array<i32>} : memref<8x8x128xf32, #tpu.memory_space<vmem>>, vector<1x8x128xf32>,
    %cst_85 = arith.constant dense<0.000000e+00> : vector<8x128xf32>
    %128 = tpu.matmul %124, %6, %cst_85 {dimension_numbers = #tpu.dot_dimension_numbers<[1], [0], [0], [1], [0, 0, 1, 1], [], []>} : vector<8x128xf32>, vector<128x128xf32>, vector<8x128xf32> -> vector<8x128xf32>
    %129 = vector.broadcast %7 : vector<1x128xf32> to vector<8x128xf32>
    %130 = arith.addf %128, %129 : vector<8x128xf32>
    %131 = math.tanh %130 : vector<8x128xf32>
    %c6_86 = arith.constant 6 : index
    %c0_87 = arith.constant 0 : index
    %c0_88 = arith.constant 0 : index
    %132 = vector.load %arg8[%c6_86, %c0_87, %c0_88] : memref<8x8x128xf32, #tpu.memory_space<vmem>>, vector<1x8x128xf32>
    %133 = vector.shape_cast %132 : vector<1x8x128xf32> to vector<8x128xf32>
    %134 = vector.shape_cast %131 : vector<8x128xf32> to vector<1x8x128xf32>
    tpu.vector_store %arg8[%c6_86, %c0_87, %c0_88], %134 {strides = array<i32>} : memref<8x8x128xf32, #tpu.memory_space<vmem>>, vector<1x8x128xf32>,
    %c7 = arith.constant 7 : index
    %c0_89 = arith.constant 0 : index
    %c0_90 = arith.constant 0 : index
    %135 = vector.load %arg2[%c7, %c0_89, %c0_90] : memref<8x8x128xf32, #tpu.memory_space<vmem>>, vector<1x8x128xf32>
    %136 = vector.shape_cast %135 : vector<1x8x128xf32> to vector<8x128xf32>
    %cst_91 = arith.constant dense<0.000000e+00> : vector<8x128xf32>
    %137 = tpu.matmul %136, %3, %cst_91 {dimension_numbers = #tpu.dot_dimension_numbers<[1], [0], [0], [1], [0, 0, 1, 1], [], []>} : vector<8x128xf32>, vector<128x128xf32>, vector<8x128xf32> -> vector<8x128xf32>
    %138 = vector.broadcast %4 : vector<1x128xf32> to vector<8x128xf32>
    %139 = arith.addf %137, %138 : vector<8x128xf32>
    %cst_92 = arith.constant dense<0.000000e+00> : vector<8x128xf32>
    %140 = tpu.matmul %124, %5, %cst_92 {dimension_numbers = #tpu.dot_dimension_numbers<[1], [0], [0], [1], [0, 0, 1, 1], [], []>} : vector<8x128xf32>, vector<128x128xf32>, vector<8x128xf32> -> vector<8x128xf32>
    %141 = arith.addf %139, %140 : vector<8x128xf32>
    %142 = math.tanh %141 : vector<8x128xf32>
    %c7_93 = arith.constant 7 : index
    %c0_94 = arith.constant 0 : index
    %c0_95 = arith.constant 0 : index
    %143 = vector.load %arg9[%c7_93, %c0_94, %c0_95] : memref<8x8x128xf32, #tpu.memory_space<vmem>>, vector<1x8x128xf32>
    %144 = vector.shape_cast %143 : vector<1x8x128xf32> to vector<8x128xf32>
    %145 = vector.shape_cast %142 : vector<8x128xf32> to vector<1x8x128xf32>
    tpu.vector_store %arg9[%c7_93, %c0_94, %c0_95], %145 {strides = array<i32>} : memref<8x8x128xf32, #tpu.memory_space<vmem>>, vector<1x8x128xf32>,
    %cst_96 = arith.constant dense<0.000000e+00> : vector<8x128xf32>
    %146 = tpu.matmul %142, %6, %cst_96 {dimension_numbers = #tpu.dot_dimension_numbers<[1], [0], [0], [1], [0, 0, 1, 1], [], []>} : vector<8x128xf32>, vector<128x128xf32>, vector<8x128xf32> -> vector<8x128xf32>
    %147 = vector.broadcast %7 : vector<1x128xf32> to vector<8x128xf32>
    %148 = arith.addf %146, %147 : vector<8x128xf32>
    %149 = math.tanh %148 : vector<8x128xf32>
    %c7_97 = arith.constant 7 : index
    %c0_98 = arith.constant 0 : index
    %c0_99 = arith.constant 0 : index
    %150 = vector.load %arg8[%c7_97, %c0_98, %c0_99] : memref<8x8x128xf32, #tpu.memory_space<vmem>>, vector<1x8x128xf32>
    %151 = vector.shape_cast %150 : vector<1x8x128xf32> to vector<8x128xf32>
    %152 = vector.shape_cast %149 : vector<8x128xf32> to vector<1x8x128xf32>
    tpu.vector_store %arg8[%c7_97, %c0_98, %c0_99], %152 {strides = array<i32>} : memref<8x8x128xf32, #tpu.memory_space<vmem>>, vector<1x8x128xf32>,
    %c0_100 = arith.constant 0 : index
    %c0_101 = arith.constant 0 : index
    %153 = vector.load %arg10[%c0_100, %c0_101] : memref<8x128xf32, #tpu.memory_space<vmem>>, vector<8x128xf32>
    tpu.vector_store %arg10[%c0_100, %c0_101], %142 {strides = array<i32>} : memref<8x128xf32, #tpu.memory_space<vmem>>, vector<8x128xf32>,
    return
  }
  func.func @transform_0(%arg0: i32, %arg1: i32) -> (i32, i32, i32) {
    %c0_i32 = arith.constant 0 : i32
    %c0_i32_0 = arith.constant 0 : i32
    return %arg1, %arg0, %c0_i32 : i32, i32, i32
  }
  func.func @transform_1(%arg0: i32, %arg1: i32) -> (i32, i32) {
    %c0_i32 = arith.constant 0 : i32
    %c0_i32_0 = arith.constant 0 : i32
    %c0_i32_1 = arith.constant 0 : i32
    return %c0_i32, %c0_i32_0 : i32, i32
  }
  func.func @transform_2(%arg0: i32, %arg1: i32) -> (i32, i32) {
    %c0_i32 = arith.constant 0 : i32
    %c0_i32_0 = arith.constant 0 : i32
    %c0_i32_1 = arith.constant 0 : i32
    return %c0_i32, %c0_i32_0 : i32, i32
  }
  func.func @transform_3(%arg0: i32, %arg1: i32) -> (i32, i32) {
    %c0_i32 = arith.constant 0 : i32
    %c0_i32_0 = arith.constant 0 : i32
    %c0_i32_1 = arith.constant 0 : i32
    return %c0_i32, %c0_i32_0 : i32, i32
  }
  func.func @transform_4(%arg0: i32, %arg1: i32) -> (i32, i32) {
    %c0_i32 = arith.constant 0 : i32
    %c0_i32_0 = arith.constant 0 : i32
    %c0_i32_1 = arith.constant 0 : i32
    return %c0_i32, %c0_i32_0 : i32, i32
  }
  func.func @transform_5(%arg0: i32, %arg1: i32) -> (i32, i32) {
    %c0_i32 = arith.constant 0 : i32
    %c0_i32_0 = arith.constant 0 : i32
    %c0_i32_1 = arith.constant 0 : i32
    return %c0_i32, %c0_i32_0 : i32, i32
  }
  func.func @transform_6(%arg0: i32, %arg1: i32) -> (i32, i32, i32) {
    %c0_i32 = arith.constant 0 : i32
    %c0_i32_0 = arith.constant 0 : i32
    return %arg1, %arg0, %c0_i32 : i32, i32, i32
  }
  func.func @transform_7(%arg0: i32, %arg1: i32) -> (i32, i32, i32) {
    %c0_i32 = arith.constant 0 : i32
    %c0_i32_0 = arith.constant 0 : i32
    return %arg1, %arg0, %c0_i32 : i32, i32, i32
  }
}

</mosaic_0001>

<bundles_post_ra>
// kernel: _lambda_.1
= control target key start
LH: loop header
LB: loop body
LE: loop exit
PB: predicated region body
PF: predicated region fallthrough
CT: control target
= control target key end

     0   :  { %13 = vsyncpa [#allocation4], 0  ;;  %s4491_s0 = inlined_call_operand.vmem [shape: f32[8,8,128], index: 0, kind: input, shape index: {}]   ;;  %s4492_s1 = inlined_call_operand.hbm [shape: f32[128,128], index: 1, kind: input, shape index: {}]   ;;  %s4493_s2 = inlined_call_operand.vmem [shape: f32[1,128], index: 2, kind: input, shape index: {}]   ;;  %s4494_s3 = inlined_call_operand.hbm [shape: f32[128,128], index: 3, kind: input, shape index: {}]   ;;  %s4495_s4 = inlined_call_operand.hbm [shape: f32[128,128], index: 4, kind: input, shape index: {}]   ;;  %s4496_s5 = inlined_call_operand.vmem [shape: f32[1,128], index: 5, kind: input, shape index: {}]   ;;  %s4497_s6 = inlined_call_operand.vmem [shape: f32[8,8,128], index: 6, kind: output, shape index: {0}]   ;;  %s4498_s7 = inlined_call_operand.vmem [shape: f32[8,8,128], index: 7, kind: output, shape index: {1}]  }
   0x1   :  { %14 = vsyncpa [#allocation6], 0  ;;  %s3318_s24 = smov [#allocation5]   ;;  %s3319_s26 = smov [#allocation3]  }
   0x2   :  { %s36_s25 = sshll.u32 %s3318_s24, 4  ;;  %s22_s27 = sshll.u32 %s3319_s26, 4  ;;  %s37_s25 = int_to_ptr.vmem [resolvable:$true] %s36_s25  ;;  %s23_s27 = int_to_ptr.vmem [resolvable:$true] %s22_s27 }
   0x3   :  { %s3262_s28 = scalar_lea.vmem %s37_s25, 2048  ;;  %p3267_p1 = scmp.lt.s32.totalorder %s37_s25, %s37_s25 }
   0x4   :  { %p3263_p0 = scmp.ne.s32.totalorder %s37_s25, %s3262_s28  ;;  %p3268_p2 = scmp.lt.s32.totalorder %s3262_s28, %s3262_s28 }
   0x6   :  { %p3269_p3 = por %p3268_p2, %p3267_p1 }
   0x8   :  { %p3270_p4 = pnand %p3269_p3, %p3263_p0 }
   0xa   :  { %3273 = shalt.err (!%p3270_p4)
}
   0xb   :  { %s3320_s29 = smov 128   ;;  %s3321_s30 = smov 8  }
   0xc   :  { %42 = dma.hbm_to_vmem [thread:$0]  %s4494_s3, 2048, %s37_s25, [#allocation6], %s3320_s29, %s3320_s29, %s3321_s30  }
   0xd   :  { %s3282_s10 = scalar_lea.vmem %s23_s27, 2048  ;;  %p3287_p6 = scmp.lt.s32.totalorder %s23_s27, %s23_s27 }
   0xe   :  { %p3283_p5 = scmp.ne.s32.totalorder %s23_s27, %s3282_s10  ;;  %p3288_p7 = scmp.lt.s32.totalorder %s3282_s10, %s3282_s10 }
  0x10   :  { %p3289_p8 = por %p3288_p7, %p3287_p6 }
  0x12   :  { %p3290_p9 = pnand %p3289_p8, %p3283_p5 }
  0x14   :  { %3293 = shalt.err (!%p3290_p9)
}
  0x15   :  { %28 = dma.hbm_to_vmem [thread:$0]  %s4492_s1, 2048, %s23_s27, [#allocation4], %s3320_s29, %s3320_s29, %s3321_s30  }
  0x16   :  { %s3322_s13 = smov [#allocation7]  }
  0x17   :  { %s48_s14 = sshll.u32 %s3322_s13, 4  ;;  %s49_s14 = int_to_ptr.vmem [resolvable:$true] %s48_s14 }
  0x18   :  { %s3302_s15 = scalar_lea.vmem %s49_s14, 2048  ;;  %p3307_p11 = scmp.lt.s32.totalorder %s49_s14, %s49_s14 }
  0x19   :  { %p3303_p10 = scmp.ne.s32.totalorder %s49_s14, %s3302_s15  ;;  %p3308_p12 = scmp.lt.s32.totalorder %s3302_s15, %s3302_s15 }
  0x1b   :  { %p3309_p13 = por %p3308_p12, %p3307_p11 }
  0x1d   :  { %p3310_p0 = pnand %p3309_p13, %p3303_p10 }
  0x1f   :  { %3313 = shalt.err (!%p3310_p0)
}
  0x20   :  { %54 = dma.hbm_to_vmem [thread:$0]  %s4495_s4, 2048, %s49_s14, [#allocation6], %s3320_s29, %s3320_s29, %s3321_s30  }
  0x21   :  { %3314 = dma.done.wait [#allocation4], 2048  }
  0x22   :  { %3315 = vsyncadd [#allocation4], 4294965248 }
  0x23   :  { %3316 = dma.done.wait [#allocation6], 4096  }
  0x24   :  { %3317 = vsyncadd [#allocation6], 4294963200  ;;  %v3323_v0 = vmov 0.0   ;;  %vm3324_vm0 = vmmov 0   ;;  %v3380_v1 = vld [vmem:[#allocation3 + $0x78] sm:$0xff]  ;;  %v3384_v3 = vld [vmem:[#allocation3 + $0x70] sm:$0xff] }
  0x25   :  { %2325 = vmatprep.subr.mxu0 %v3323_v0  ;;  %2360 = vmatprep.subr.mxu1 %v3323_v0  ;;  %v3382_v2 = vld [vmem:[#allocation5 + $0x78] sm:$0xff]  ;;  %v3388_v4 = vld [vmem:[#allocation5 + $0x70] sm:$0xff]  ;;  %v3392_v5 = vld [vmem:[#allocation3 + $0x68] sm:$0xff] }
  0x26   :  { %2357 = vmatprep.mubr.msk.f32.mxu0 %vm3324_vm0, %v3323_v0  ;;  %2392 = vmatprep.mubr.msk.f32.mxu1 %vm3324_vm0, %v3323_v0  ;;  %v3394_v6 = vld [vmem:[#allocation5 + $0x68] sm:$0xff]  ;;  %v3400_v7 = vld [vmem:[#allocation3 + $0x60] sm:$0xff]  ;;  %v3408_v9 = vld [vmem:[#allocation3 + $0x58] sm:$0xff] }
  0x27   :  { %2326 = vmatpush3.msra.mxu0 %v3380_v1  ;;  %2361 = vmatpush3.msra.mxu1 %v3382_v2  ;;  %v3402_v8 = vld [vmem:[#allocation5 + $0x60] sm:$0xff]  ;;  %v3410_v10 = vld [vmem:[#allocation5 + $0x58] sm:$0xff]  ;;  %v3416_v11 = vld [vmem:[#allocation3 + $0x50] sm:$0xff] }
  0x28   :  { %2327 = vmatprep.subr.mxu0 %v3323_v0  ;;  %2362 = vmatprep.subr.mxu1 %v3323_v0  ;;  %v3418_v12 = vld [vmem:[#allocation5 + $0x50] sm:$0xff]  ;;  %v3424_v13 = vld [vmem:[#allocation3 + $0x48] sm:$0xff]  ;;  %v3432_v15 = vld [vmem:[#allocation3 + $0x40] sm:$0xff] }
  0x29   :  { %2328 = vmatpush3.msra.mxu0 %v3384_v3  ;;  %2363 = vmatpush3.msra.mxu1 %v3388_v4  ;;  %v3426_v14 = vld [vmem:[#allocation5 + $0x48] sm:$0xff]  ;;  %v3434_v16 = vld [vmem:[#allocation5 + $0x40] sm:$0xff]  ;;  %v3440_v17 = vld [vmem:[#allocation3 + $0x38] sm:$0xff] }
  0x2a   :  { %2329 = vmatprep.subr.mxu0 %v3323_v0  ;;  %2364 = vmatprep.subr.mxu1 %v3323_v0  ;;  %v3442_v18 = vld [vmem:[#allocation5 + $0x38] sm:$0xff]  ;;  %v3448_v19 = vld [vmem:[#allocation3 + $0x30] sm:$0xff]  ;;  %v3456_v21 = vld [vmem:[#allocation3 + $0x28] sm:$0xff] }
  0x2b   :  { %2330 = vmatpush3.msra.mxu0 %v3392_v5  ;;  %2365 = vmatpush3.msra.mxu1 %v3394_v6  ;;  %v3450_v20 = vld [vmem:[#allocation5 + $0x30] sm:$0xff]  ;;  %v3458_v22 = vld [vmem:[#allocation5 + $0x28] sm:$0xff]  ;;  %v3464_v23 = vld [vmem:[#allocation3 + $0x20] sm:$0xff] }
  0x2c   :  { %2331 = vmatprep.subr.mxu0 %v3323_v0  ;;  %2366 = vmatprep.subr.mxu1 %v3323_v0  ;;  %v3466_v24 = vld [vmem:[#allocation5 + $0x20] sm:$0xff]  ;;  %v3472_v25 = vld [vmem:[#allocation3 + $0x18] sm:$0xff]  ;;  %v3480_v27 = vld [vmem:[#allocation3 + $0x10] sm:$0xff] }
  0x2d   :  { %2332 = vmatpush3.msra.mxu0 %v3400_v7  ;;  %2367 = vmatpush3.msra.mxu1 %v3402_v8  ;;  %v3474_v26 = vld [vmem:[#allocation5 + $0x18] sm:$0xff]  ;;  %v3482_v28 = vld [vmem:[#allocation5 + $0x10] sm:$0xff]  ;;  %v3488_v29 = vld [vmem:[#allocation3 + $0x8] sm:$0xff] }
  0x2e   :  { %2333 = vmatprep.subr.mxu0 %v3323_v0  ;;  %2368 = vmatprep.subr.mxu1 %v3323_v0  ;;  %v3490_v30 = vld [vmem:[#allocation5 + $0x8] sm:$0xff]  ;;  %v3496_v31 = vld [vmem:[#allocation3] sm:$0xff]  ;;  %v3509_v34 = vld [vmem:[#allocation7 + $0x78] sm:$0xff] }
  0x2f   :  { %2334 = vmatpush3.msra.mxu0 %v3408_v9  ;;  %2369 = vmatpush3.msra.mxu1 %v3410_v10  ;;  %v3498_v32 = vld [vmem:[#allocation5] sm:$0xff]  ;;  %v3513_v35 = vld [vmem:[#allocation7 + $0x70] sm:$0xff]  ;;  %v3519_v36 = vld [vmem:[#allocation7 + $0x68] sm:$0xff] }
  0x30   :  { %2335 = vmatprep.subr.mxu0 %v3323_v0  ;;  %2370 = vmatprep.subr.mxu1 %v3323_v0  ;;  %v122_v33 = vld [vmem:[%s4491_s0] sm:$0xff]  ;;  %v3532_v38 = vld [vmem:[#allocation7 + $0x58] sm:$0xff]  ;;  %v3538_v39 = vld [vmem:[#allocation7 + $0x50] sm:$0xff] }
  0x31   :  { %2336 = vmatpush3.msra.mxu0 %v3416_v11  ;;  %2371 = vmatpush3.msra.mxu1 %v3418_v12  ;;  %v3525_v37 = vld [vmem:[#allocation7 + $0x60] sm:$0xff]  ;;  %v3544_v40 = vld [vmem:[#allocation7 + $0x48] sm:$0xff]  ;;  %v3580_v42 = vld [vmem:[#allocation7 + $0x38] sm:$0xff] }
  0x32   :  { %2337 = vmatprep.subr.mxu0 %v3323_v0  ;;  %2372 = vmatprep.subr.mxu1 %v3323_v0  ;;  %v3576_v41 = vld [vmem:[#allocation7 + $0x40] sm:$0xff]  ;;  %v3584_v43 = vld [vmem:[#allocation7 + $0x30] sm:$0xff]  ;;  %v3588_v44 = vld [vmem:[#allocation7 + $0x28] sm:$0xff] }
  0x33   :  { %2338 = vmatpush3.msra.mxu0 %v3424_v13  ;;  %2373 = vmatpush3.msra.mxu1 %v3426_v14  ;;  %v3592_v45 = vld [vmem:[#allocation7 + $0x20] sm:$0xff]  ;;  %v3596_v46 = vld [vmem:[#allocation7 + $0x18] sm:$0xff]  ;;  %v3600_v47 = vld [vmem:[#allocation7 + $0x10] sm:$0xff] }
  0x34   :  { %2339 = vmatprep.subr.mxu0 %v3323_v0  ;;  %2374 = vmatprep.subr.mxu1 %v3323_v0  ;;  %v3604_v48 = vld [vmem:[#allocation7 + $0x8] sm:$0xff]  ;;  %v3608_v49 = vld [vmem:[#allocation7] sm:$0xff]  ;;  %v1899_v61 = vld [vmem:[%s4491_s0 + $0x10] sm:$0xff] }
  0x35   :  { %2340 = vmatpush3.msra.mxu0 %v3432_v15  ;;  %2375 = vmatpush3.msra.mxu1 %v3434_v16  ;;  %v1896_v50 = vld [vmem:[%s4491_s0 + $0x8] sm:$0xff]  ;;  %v3652_v51 = vld [vmem:[%s4493_s2] ss:$0 sm:$0xff] }
  0x36   :  { %2341 = vmatprep.subr.mxu0 %v3323_v0  ;;  %2376 = vmatprep.subr.mxu1 %v3323_v0  ;;  %v3766_v62 = vld [vmem:[%s4496_s5] ss:$0 sm:$0xff] }
  0x37   :  { %2342 = vmatpush3.msra.mxu0 %v3440_v17  ;;  %2377 = vmatpush3.msra.mxu1 %v3442_v18 }
  0x38   :  { %2343 = vmatprep.subr.mxu0 %v3323_v0  ;;  %2378 = vmatprep.subr.mxu1 %v3323_v0 }
  0x39   :  { %2344 = vmatpush3.msra.mxu0 %v3448_v19  ;;  %2379 = vmatpush3.msra.mxu1 %v3450_v20 }
  0x3a   :  { %2345 = vmatprep.subr.mxu0 %v3323_v0  ;;  %2380 = vmatprep.subr.mxu1 %v3323_v0 }
  0x3b   :  { %2346 = vmatpush3.msra.mxu0 %v3456_v21  ;;  %2381 = vmatpush3.msra.mxu1 %v3458_v22 }
  0x3c   :  { %2347 = vmatprep.subr.mxu0 %v3323_v0  ;;  %2382 = vmatprep.subr.mxu1 %v3323_v0 }
  0x3d   :  { %2348 = vmatpush3.msra.mxu0 %v3464_v23  ;;  %2383 = vmatpush3.msra.mxu1 %v3466_v24 }
  0x3e   :  { %2349 = vmatprep.subr.mxu0 %v3323_v0  ;;  %2384 = vmatprep.subr.mxu1 %v3323_v0 }
  0x3f   :  { %2350 = vmatpush3.msra.mxu0 %v3472_v25  ;;  %2385 = vmatpush3.msra.mxu1 %v3474_v26 }
  0x40   :  { %2351 = vmatprep.subr.mxu0 %v3323_v0  ;;  %2386 = vmatprep.subr.mxu1 %v3323_v0 }
  0x41   :  { %2352 = vmatpush3.msra.mxu0 %v3480_v27  ;;  %2387 = vmatpush3.msra.mxu1 %v3482_v28 }
  0x42   :  { %2353 = vmatprep.subr.mxu0 %v3323_v0  ;;  %2388 = vmatprep.subr.mxu1 %v3323_v0 }
  0x43   :  { %2354 = vmatpush3.msra.mxu0 %v3488_v29  ;;  %2389 = vmatpush3.msra.mxu1 %v3490_v30 }
  0x44   :  { %2355 = vmatprep.subr.mxu0 %v3323_v0  ;;  %2390 = vmatprep.subr.mxu1 %v3323_v0 }
  0x45   :  { %2356 = vmatpush3.msra.mxu0 %v3496_v31  ;;  %2391 = vmatpush3.msra.mxu1 %v3498_v32 }
  0x46   :  { %2358 = vmatmul.mubr.f32.vlgmr.msra.gmra.mxu0 %v122_v33  ;;  %2393 = vmatmul.mubr.f32.vlgmr.msra.gmra.mxu1 %v3323_v0 }
  0x47   :  { %2395 = vmatprep.subr.mxu0 %v3323_v0  ;;  %2430 = vmatprep.subr.mxu1 %v3323_v0 }
  0x48   :  { %2396 = vmatpush3.msra.mxu0 %v3509_v34  ;;  %2431 = vmatpush3.msra.mxu1 %v3380_v1 }
  0x49   :  { %2397 = vmatprep.subr.mxu0 %v3323_v0  ;;  %2432 = vmatprep.subr.mxu1 %v3323_v0 }
  0x4a   :  { %2398 = vmatpush3.msra.mxu0 %v3513_v35  ;;  %2433 = vmatpush3.msra.mxu1 %v3384_v3 }
  0x4b   :  { %2399 = vmatprep.subr.mxu0 %v3323_v0  ;;  %2427 = vmatprep.mubr.msk.f32.mxu0 %vm3324_vm0, %v3323_v0 }
  0x4c   :  { %2400 = vmatpush3.msra.mxu0 %v3519_v36  ;;  %2434 = vmatprep.subr.mxu1 %v3323_v0 }
  0x4d   :  { %2401 = vmatprep.subr.mxu0 %v3323_v0  ;;  %2435 = vmatpush3.msra.mxu1 %v3392_v5 }
  0x4e   :  { %2402 = vmatpush3.msra.mxu0 %v3525_v37  ;;  %2436 = vmatprep.subr.mxu1 %v3323_v0 }
  0x4f   :  { %2403 = vmatprep.subr.mxu0 %v3323_v0  ;;  %2437 = vmatpush3.msra.mxu1 %v3400_v7 }
  0x50   :  { %2404 = vmatpush3.msra.mxu0 %v3532_v38  ;;  %2438 = vmatprep.subr.mxu1 %v3323_v0 }
  0x51   :  { %2405 = vmatprep.subr.mxu0 %v3323_v0  ;;  %2439 = vmatpush3.msra.mxu1 %v3408_v9 }
  0x52   :  { %2406 = vmatpush3.msra.mxu0 %v3538_v39  ;;  %2440 = vmatprep.subr.mxu1 %v3323_v0 }
  0x53   :  { %2407 = vmatprep.subr.mxu0 %v3323_v0  ;;  %2441 = vmatpush3.msra.mxu1 %v3416_v11 }
  0x54   :  { %2408 = vmatpush3.msra.mxu0 %v3544_v40  ;;  %2442 = vmatprep.subr.mxu1 %v3323_v0 }
  0x55   :  { %2409 = vmatprep.subr.mxu0 %v3323_v0  ;;  %2443 = vmatpush3.msra.mxu1 %v3424_v13 }
  0x56   :  { %2444 = vmatprep.subr.mxu1 %v3323_v0  ;;  %2462 = vmatprep.mubr.msk.f32.mxu1 %vm3324_vm0, %v3323_v0 }
  0x57   :  { %2445 = vmatpush3.msra.mxu1 %v3432_v15  ;;  %2410 = vmatpush3.msra.mxu0 %v3576_v41 }
  0x58   :  { %2446 = vmatprep.subr.mxu1 %v3323_v0  ;;  %2411 = vmatprep.subr.mxu0 %v3323_v0 }
  0x59   :  { %2447 = vmatpush3.msra.mxu1 %v3440_v17  ;;  %2412 = vmatpush3.msra.mxu0 %v3580_v42 }
  0x5a   :  { %2448 = vmatprep.subr.mxu1 %v3323_v0  ;;  %2413 = vmatprep.subr.mxu0 %v3323_v0 }
  0x5b   :  { %2449 = vmatpush3.msra.mxu1 %v3448_v19  ;;  %2414 = vmatpush3.msra.mxu0 %v3584_v43 }
  0x5c   :  { %2450 = vmatprep.subr.mxu1 %v3323_v0  ;;  %2415 = vmatprep.subr.mxu0 %v3323_v0 }
  0x5d   :  { %2451 = vmatpush3.msra.mxu1 %v3456_v21  ;;  %2416 = vmatpush3.msra.mxu0 %v3588_v44 }
  0x5e   :  { %2452 = vmatprep.subr.mxu1 %v3323_v0  ;;  %2417 = vmatprep.subr.mxu0 %v3323_v0 }
  0x5f   :  { %2453 = vmatpush3.msra.mxu1 %v3464_v23  ;;  %2418 = vmatpush3.msra.mxu0 %v3592_v45 }
  0x60   :  { %2454 = vmatprep.subr.mxu1 %v3323_v0  ;;  %2419 = vmatprep.subr.mxu0 %v3323_v0 }
  0x61   :  { %2455 = vmatpush3.msra.mxu1 %v3472_v25  ;;  %2420 = vmatpush3.msra.mxu0 %v3596_v46 }
  0x62   :  { %2456 = vmatprep.subr.mxu1 %v3323_v0  ;;  %2421 = vmatprep.subr.mxu0 %v3323_v0 }
  0x63   :  { %2457 = vmatpush3.msra.mxu1 %v3480_v27  ;;  %2422 = vmatpush3.msra.mxu0 %v3600_v47 }
  0x64   :  { %2458 = vmatprep.subr.mxu1 %v3323_v0  ;;  %2423 = vmatprep.subr.mxu0 %v3323_v0 }
  0x65   :  { %2459 = vmatpush3.msra.mxu1 %v3488_v29  ;;  %2424 = vmatpush3.msra.mxu0 %v3604_v48 }
  0x66   :  { %2460 = vmatprep.subr.mxu1 %v3323_v0  ;;  %2425 = vmatprep.subr.mxu0 %v3323_v0 }
  0x67   :  { %2461 = vmatpush3.msra.mxu1 %v3496_v31  ;;  %2426 = vmatpush3.msra.mxu0 %v3608_v49 }
  0x68   :  { %2500 = vmatprep.subr.mxu1 %v3323_v0  ;;  %2465 = vmatprep.subr.mxu0 %v3323_v0 }
  0x69   :  { %2463 = vmatmul.mubr.f32.vlgmr.msra.gmra.mxu1 %v1896_v50 }
  0x6a   :  { %2501 = vmatpush3.msra.mxu1 %v3509_v34  ;;  %2532 = vmatprep.mubr.msk.f32.mxu1 %vm3324_vm0, %v3323_v0 }
  0x6b   :  { %2502 = vmatprep.subr.mxu1 %v3323_v0 }
  0x6c   :  { %2503 = vmatpush3.msra.mxu1 %v3513_v35 }
  0x6d   :  { %2504 = vmatprep.subr.mxu1 %v3323_v0 }
  0x6e   :  { %2505 = vmatpush3.msra.mxu1 %v3519_v36 }
  0x6f   :  { %2506 = vmatprep.subr.mxu1 %v3323_v0 }
  0x70   :  { %2507 = vmatpush3.msra.mxu1 %v3525_v37 }
  0x71   :  { %2508 = vmatprep.subr.mxu1 %v3323_v0 }
  0x72   :  { %2509 = vmatpush3.msra.mxu1 %v3532_v38 }
  0x73   :  { %2510 = vmatprep.subr.mxu1 %v3323_v0 }
  0x74   :  { %2511 = vmatpush3.msra.mxu1 %v3538_v39 }
  0x75   :  { %2512 = vmatprep.subr.mxu1 %v3323_v0 }
  0x76   :  { %2513 = vmatpush3.msra.mxu1 %v3544_v40 }
  0x77   :  { %2514 = vmatprep.subr.mxu1 %v3323_v0 }
  0x78   :  { %2515 = vmatpush3.msra.mxu1 %v3576_v41 }
  0x79   :  { %2516 = vmatprep.subr.mxu1 %v3323_v0 }
  0x7a   :  { %2517 = vmatpush3.msra.mxu1 %v3580_v42 }
  0x7b   :  { %2518 = vmatprep.subr.mxu1 %v3323_v0 }
  0x7c   :  { %2519 = vmatpush3.msra.mxu1 %v3584_v43 }
  0x7d   :  { %2520 = vmatprep.subr.mxu1 %v3323_v0 }
  0x7e   :  { %2521 = vmatpush3.msra.mxu1 %v3588_v44 }
  0x7f   :  { %2522 = vmatprep.subr.mxu1 %v3323_v0 }
  0x80   :  { %2523 = vmatpush3.msra.mxu1 %v3592_v45 }
  0x81   :  { %2524 = vmatprep.subr.mxu1 %v3323_v0 }
  0x82   :  { %2525 = vmatpush3.msra.mxu1 %v3596_v46 }
  0x83   :  { %2526 = vmatprep.subr.mxu1 %v3323_v0 }
  0x84   :  { %2527 = vmatpush3.msra.mxu1 %v3600_v47 }
  0x85   :  { %2528 = vmatprep.subr.mxu1 %v3323_v0 }
  0x86   :  { %2529 = vmatpush3.msra.mxu1 %v3604_v48 }
  0x87   :  { %2530 = vmatprep.subr.mxu1 %v3323_v0 }
  0x88   :  { %2531 = vmatpush3.msra.mxu1 %v3608_v49 }
  0x89   :  { %2570 = vmatprep.subr.mxu1 %v3323_v0 }
 0x106   :  { %v195_v52 = vpop.f32.mrf.mxu0  ;;  %v265_v53 = vpop.f32.mrf.mxu1 }
 0x107   :  { %v196_v54 = vadd.f32 %v3652_v51, %v195_v52 }
 0x108   :  { %v2359_v55 = vpop.f32.mrf.mxu0  ;;  %v2394_v56 = vpop.f32.mrf.mxu1 }
 0x109   :  { %v269_v57 = vadd.f32 %v265_v53, %v196_v54 }
 0x10b   :  { %3172 = vtanh.f32 %v269_v57 }
 0x118   :  { %v3173_v58 = vpop.eup %3172 }
 0x119   :  { %271 = vst [vmem:[%s4498_s7] sm:$0xff] %v3173_v58  ;;  %2428 = vmatmul.mubr.f32.vlgmr.msra.gmra.mxu0 %v3173_v58 }
 0x11a   :  { %2466 = vmatpush3.msra.mxu0 %v3382_v2  ;;  %2497 = vmatprep.mubr.msk.f32.mxu0 %vm3324_vm0, %v3323_v0 }
 0x11b   :  { %2467 = vmatprep.subr.mxu0 %v3323_v0 }
 0x11c   :  { %2468 = vmatpush3.msra.mxu0 %v3388_v4 }
 0x11d   :  { %2469 = vmatprep.subr.mxu0 %v3323_v0 }
 0x11e   :  { %2470 = vmatpush3.msra.mxu0 %v3394_v6 }
 0x11f   :  { %2471 = vmatprep.subr.mxu0 %v3323_v0 }
 0x120   :  { %2472 = vmatpush3.msra.mxu0 %v3402_v8 }
 0x121   :  { %2473 = vmatprep.subr.mxu0 %v3323_v0 }
 0x122   :  { %2474 = vmatpush3.msra.mxu0 %v3410_v10 }
 0x123   :  { %2475 = vmatprep.subr.mxu0 %v3323_v0 }
 0x124   :  { %2476 = vmatpush3.msra.mxu0 %v3418_v12 }
 0x125   :  { %2477 = vmatprep.subr.mxu0 %v3323_v0 }
 0x126   :  { %2478 = vmatpush3.msra.mxu0 %v3426_v14 }
 0x127   :  { %2479 = vmatprep.subr.mxu0 %v3323_v0 }
 0x128   :  { %2480 = vmatpush3.msra.mxu0 %v3434_v16 }
 0x129   :  { %2481 = vmatprep.subr.mxu0 %v3323_v0  ;;  %v418_v59 = vpop.f32.mrf.mxu1 }
 0x12a   :  { %2482 = vmatpush3.msra.mxu0 %v3442_v18  ;;  %v419_v53 = vadd.f32 %v3652_v51, %v418_v59 }
 0x12b   :  { %2483 = vmatprep.subr.mxu0 %v3323_v0  ;;  %v2464_v60 = vpop.f32.mrf.mxu1 }
 0x12c   :  { %2484 = vmatpush3.msra.mxu0 %v3450_v20  ;;  %v1902_v60 = vld [vmem:[%s4491_s0 + $0x18] sm:$0xff] }
 0x12d   :  { %2485 = vmatprep.subr.mxu0 %v3323_v0 }
 0x12e   :  { %2486 = vmatpush3.msra.mxu0 %v3458_v22 }
 0x12f   :  { %2487 = vmatprep.subr.mxu0 %v3323_v0 }
 0x130   :  { %2488 = vmatpush3.msra.mxu0 %v3466_v24 }
 0x131   :  { %2489 = vmatprep.subr.mxu0 %v3323_v0 }
 0x132   :  { %2490 = vmatpush3.msra.mxu0 %v3474_v26 }
 0x133   :  { %2491 = vmatprep.subr.mxu0 %v3323_v0 }
 0x134   :  { %2492 = vmatpush3.msra.mxu0 %v3482_v28 }
 0x135   :  { %2493 = vmatprep.subr.mxu0 %v3323_v0 }
 0x136   :  { %2494 = vmatpush3.msra.mxu0 %v3490_v30 }
 0x137   :  { %2495 = vmatprep.subr.mxu0 %v3323_v0 }
 0x138   :  { %2496 = vmatpush3.msra.mxu0 %v3498_v32 }
 0x139   :  { %2498 = vmatmul.mubr.f32.vlgmr.msra.gmra.mxu0 %v3173_v58  ;;  %2535 = vmatprep.subr.mxu0 %v3323_v0 }
 0x13a   :  { %2536 = vmatpush3.msra.mxu0 %v3380_v1  ;;  %2567 = vmatprep.mubr.msk.f32.mxu0 %vm3324_vm0, %v3323_v0 }
 0x13b   :  { %2537 = vmatprep.subr.mxu0 %v3323_v0 }
 0x13c   :  { %2538 = vmatpush3.msra.mxu0 %v3384_v3 }
 0x13d   :  { %2539 = vmatprep.subr.mxu0 %v3323_v0 }
 0x13e   :  { %2540 = vmatpush3.msra.mxu0 %v3392_v5 }
 0x13f   :  { %2541 = vmatprep.subr.mxu0 %v3323_v0 }
 0x140   :  { %2542 = vmatpush3.msra.mxu0 %v3400_v7 }
 0x141   :  { %2543 = vmatprep.subr.mxu0 %v3323_v0 }
 0x142   :  { %2544 = vmatpush3.msra.mxu0 %v3408_v9 }
 0x143   :  { %2545 = vmatprep.subr.mxu0 %v3323_v0 }
 0x144   :  { %2546 = vmatpush3.msra.mxu0 %v3416_v11 }
 0x145   :  { %2547 = vmatprep.subr.mxu0 %v3323_v0 }
 0x146   :  { %2548 = vmatpush3.msra.mxu0 %v3424_v13 }
 0x147   :  { %2549 = vmatprep.subr.mxu0 %v3323_v0 }
 0x148   :  { %2550 = vmatpush3.msra.mxu0 %v3432_v15 }
 0x149   :  { %2551 = vmatprep.subr.mxu0 %v3323_v0 }
 0x14a   :  { %2552 = vmatpush3.msra.mxu0 %v3440_v17 }
 0x14b   :  { %2553 = vmatprep.subr.mxu0 %v3323_v0 }
 0x14c   :  { %2554 = vmatpush3.msra.mxu0 %v3448_v19 }
 0x14d   :  { %2555 = vmatprep.subr.mxu0 %v3323_v0 }
 0x14e   :  { %2556 = vmatpush3.msra.mxu0 %v3456_v21 }
 0x14f   :  { %2557 = vmatprep.subr.mxu0 %v3323_v0 }
 0x150   :  { %2558 = vmatpush3.msra.mxu0 %v3464_v23 }
 0x151   :  { %2559 = vmatprep.subr.mxu0 %v3323_v0 }
 0x152   :  { %2560 = vmatpush3.msra.mxu0 %v3472_v25 }
 0x153   :  { %2561 = vmatprep.subr.mxu0 %v3323_v0 }
 0x154   :  { %2562 = vmatpush3.msra.mxu0 %v3480_v27 }
 0x155   :  { %2563 = vmatprep.subr.mxu0 %v3323_v0 }
 0x156   :  { %2564 = vmatpush3.msra.mxu0 %v3488_v29 }
 0x157   :  { %2565 = vmatprep.subr.mxu0 %v3323_v0 }
 0x158   :  { %2566 = vmatpush3.msra.mxu0 %v3496_v31 }
 0x159   :  { %2605 = vmatprep.subr.mxu0 %v3323_v0  ;;  %2568 = vmatmul.mubr.f32.vlgmr.msra.gmra.mxu0 %v1899_v61 }
 0x15a   :  { %2606 = vmatpush3.msra.mxu0 %v3509_v34  ;;  %2637 = vmatprep.mubr.msk.f32.mxu0 %vm3324_vm0, %v3323_v0 }
 0x15b   :  { %2607 = vmatprep.subr.mxu0 %v3323_v0 }
 0x15c   :  { %2608 = vmatpush3.msra.mxu0 %v3513_v35 }
 0x15d   :  { %2609 = vmatprep.subr.mxu0 %v3323_v0 }
 0x15e   :  { %2610 = vmatpush3.msra.mxu0 %v3519_v36 }
 0x15f   :  { %2611 = vmatprep.subr.mxu0 %v3323_v0 }
 0x160   :  { %2612 = vmatpush3.msra.mxu0 %v3525_v37 }
 0x161   :  { %2613 = vmatprep.subr.mxu0 %v3323_v0 }
 0x162   :  { %2614 = vmatpush3.msra.mxu0 %v3532_v38 }
 0x163   :  { %2615 = vmatprep.subr.mxu0 %v3323_v0 }
 0x164   :  { %2616 = vmatpush3.msra.mxu0 %v3538_v39 }
 0x165   :  { %2617 = vmatprep.subr.mxu0 %v3323_v0 }
 0x166   :  { %2618 = vmatpush3.msra.mxu0 %v3544_v40 }
 0x167   :  { %2619 = vmatprep.subr.mxu0 %v3323_v0 }
 0x168   :  { %2620 = vmatpush3.msra.mxu0 %v3576_v41 }
 0x169   :  { %2621 = vmatprep.subr.mxu0 %v3323_v0 }
 0x16a   :  { %2622 = vmatpush3.msra.mxu0 %v3580_v42 }
 0x16b   :  { %2623 = vmatprep.subr.mxu0 %v3323_v0 }
 0x16c   :  { %2624 = vmatpush3.msra.mxu0 %v3584_v43 }
 0x16d   :  { %2625 = vmatprep.subr.mxu0 %v3323_v0 }
 0x16e   :  { %2626 = vmatpush3.msra.mxu0 %v3588_v44 }
 0x16f   :  { %2627 = vmatprep.subr.mxu0 %v3323_v0 }
 0x170   :  { %2628 = vmatpush3.msra.mxu0 %v3592_v45 }
 0x171   :  { %2629 = vmatprep.subr.mxu0 %v3323_v0 }
 0x172   :  { %2630 = vmatpush3.msra.mxu0 %v3596_v46 }
 0x173   :  { %2631 = vmatprep.subr.mxu0 %v3323_v0 }
 0x174   :  { %2632 = vmatpush3.msra.mxu0 %v3600_v47 }
 0x175   :  { %2633 = vmatprep.subr.mxu0 %v3323_v0 }
 0x176   :  { %2634 = vmatpush3.msra.mxu0 %v3604_v48 }
 0x177   :  { %2635 = vmatprep.subr.mxu0 %v3323_v0 }
 0x178   :  { %2636 = vmatpush3.msra.mxu0 %v3608_v49 }
 0x179   :  { %2675 = vmatprep.subr.mxu0 %v3323_v0 }
 0x1d9   :  { %v344_v63 = vpop.f32.mrf.mxu0 }
 0x1da   :  { %v345_v33 = vadd.f32 %v3766_v62, %v344_v63 }
 0x1db   :  { %v2429_v50 = vpop.f32.mrf.mxu0 }
 0x1dc   :  { %3174 = vtanh.f32 %v345_v33 }
 0x1e9   :  { %v3175_v52 = vpop.eup %3174 }
 0x1ea   :  { %349 = vst [vmem:[%s4497_s6] sm:$0xff] %v3175_v52 }
 0x1f9   :  { %v488_v54 = vpop.f32.mrf.mxu0 }
 0x1fa   :  { %v492_v55 = vadd.f32 %v488_v54, %v419_v53 }
 0x1fb   :  { %v2499_v56 = vpop.f32.mrf.mxu0 }
 0x1fc   :  { %3176 = vtanh.f32 %v492_v55 }
 0x209   :  { %v3177_v57 = vpop.eup %3176 }
 0x20a   :  { %1897 = vst [vmem:[%s4498_s7 + $0x8] sm:$0xff] %v3177_v57  ;;  %2533 = vmatmul.mubr.f32.vlgmr.msra.gmra.mxu1 %v3177_v57 }
 0x20b   :  { %2571 = vmatpush3.msra.mxu1 %v3382_v2  ;;  %2602 = vmatprep.mubr.msk.f32.mxu1 %vm3324_vm0, %v3323_v0 }
 0x20c   :  { %2572 = vmatprep.subr.mxu1 %v3323_v0 }
 0x20d   :  { %2573 = vmatpush3.msra.mxu1 %v3388_v4 }
 0x20e   :  { %2574 = vmatprep.subr.mxu1 %v3323_v0 }
 0x20f   :  { %2575 = vmatpush3.msra.mxu1 %v3394_v6 }
 0x210   :  { %2576 = vmatprep.subr.mxu1 %v3323_v0 }
 0x211   :  { %2577 = vmatpush3.msra.mxu1 %v3402_v8 }
 0x212   :  { %2578 = vmatprep.subr.mxu1 %v3323_v0 }
 0x213   :  { %2579 = vmatpush3.msra.mxu1 %v3410_v10 }
 0x214   :  { %2580 = vmatprep.subr.mxu1 %v3323_v0 }
 0x215   :  { %2581 = vmatpush3.msra.mxu1 %v3418_v12 }
 0x216   :  { %2582 = vmatprep.subr.mxu1 %v3323_v0 }
 0x217   :  { %2583 = vmatpush3.msra.mxu1 %v3426_v14 }
 0x218   :  { %2584 = vmatprep.subr.mxu1 %v3323_v0 }
 0x219   :  { %2585 = vmatpush3.msra.mxu1 %v3434_v16  ;;  %v637_v58 = vpop.f32.mrf.mxu0 }
 0x21a   :  { %2586 = vmatprep.subr.mxu1 %v3323_v0  ;;  %v638_v52 = vadd.f32 %v3652_v51, %v637_v58  ;;  %v4130_v58 = vld [vmem:[#allocation3] sm:$0xff] }
 0x21b   :  { %2587 = vmatpush3.msra.mxu1 %v3442_v18  ;;  %v2569_v59 = vpop.f32.mrf.mxu0 }
 0x21c   :  { %2588 = vmatprep.subr.mxu1 %v3323_v0 }
 0x21d   :  { %2589 = vmatpush3.msra.mxu1 %v3450_v20 }
 0x21e   :  { %2590 = vmatprep.subr.mxu1 %v3323_v0 }
 0x21f   :  { %2591 = vmatpush3.msra.mxu1 %v3458_v22 }
 0x220   :  { %2592 = vmatprep.subr.mxu1 %v3323_v0 }
 0x221   :  { %2593 = vmatpush3.msra.mxu1 %v3466_v24 }
 0x222   :  { %2594 = vmatprep.subr.mxu1 %v3323_v0 }
 0x223   :  { %2595 = vmatpush3.msra.mxu1 %v3474_v26 }
 0x224   :  { %2596 = vmatprep.subr.mxu1 %v3323_v0 }
 0x225   :  { %2597 = vmatpush3.msra.mxu1 %v3482_v28 }
 0x226   :  { %2598 = vmatprep.subr.mxu1 %v3323_v0 }
 0x227   :  { %2599 = vmatpush3.msra.mxu1 %v3490_v30 }
 0x228   :  { %2600 = vmatprep.subr.mxu1 %v3323_v0 }
 0x229   :  { %2601 = vmatpush3.msra.mxu1 %v3498_v32 }
 0x22a   :  { %2603 = vmatmul.mubr.f32.vlgmr.msra.gmra.mxu1 %v3177_v57  ;;  %2640 = vmatprep.subr.mxu1 %v3323_v0  ;;  %v4126_v57 = vld [vmem:[#allocation3 + $0x8] sm:$0xff] }
 0x22b   :  { %2641 = vmatpush3.msra.mxu1 %v3380_v1  ;;  %2672 = vmatprep.mubr.msk.f32.mxu1 %vm3324_vm0, %v3323_v0 }
 0x22c   :  { %2642 = vmatprep.subr.mxu1 %v3323_v0 }
 0x22d   :  { %2643 = vmatpush3.msra.mxu1 %v3384_v3 }
 0x22e   :  { %2644 = vmatprep.subr.mxu1 %v3323_v0 }
 0x22f   :  { %2645 = vmatpush3.msra.mxu1 %v3392_v5 }
 0x230   :  { %2646 = vmatprep.subr.mxu1 %v3323_v0 }
 0x231   :  { %2647 = vmatpush3.msra.mxu1 %v3400_v7 }
 0x232   :  { %2648 = vmatprep.subr.mxu1 %v3323_v0 }
 0x233   :  { %2649 = vmatpush3.msra.mxu1 %v3408_v9 }
 0x234   :  { %2650 = vmatprep.subr.mxu1 %v3323_v0 }
 0x235   :  { %2651 = vmatpush3.msra.mxu1 %v3416_v11 }
 0x236   :  { %2652 = vmatprep.subr.mxu1 %v3323_v0 }
 0x237   :  { %2653 = vmatpush3.msra.mxu1 %v3424_v13 }
 0x238   :  { %2654 = vmatprep.subr.mxu1 %v3323_v0 }
 0x239   :  { %2655 = vmatpush3.msra.mxu1 %v3432_v15 }
 0x23a   :  { %2656 = vmatprep.subr.mxu1 %v3323_v0 }
 0x23b   :  { %2657 = vmatpush3.msra.mxu1 %v3440_v17 }
 0x23c   :  { %2658 = vmatprep.subr.mxu1 %v3323_v0 }
 0x23d   :  { %2659 = vmatpush3.msra.mxu1 %v3448_v19 }
 0x23e   :  { %2660 = vmatprep.subr.mxu1 %v3323_v0 }
 0x23f   :  { %2661 = vmatpush3.msra.mxu1 %v3456_v21 }
 0x240   :  { %2662 = vmatprep.subr.mxu1 %v3323_v0 }
 0x241   :  { %2663 = vmatpush3.msra.mxu1 %v3464_v23 }
 0x242   :  { %2664 = vmatprep.subr.mxu1 %v3323_v0 }
 0x243   :  { %2665 = vmatpush3.msra.mxu1 %v3472_v25 }
 0x244   :  { %2666 = vmatprep.subr.mxu1 %v3323_v0 }
 0x245   :  { %2667 = vmatpush3.msra.mxu1 %v3480_v27 }
 0x246   :  { %2668 = vmatprep.subr.mxu1 %v3323_v0 }
 0x247   :  { %2669 = vmatpush3.msra.mxu1 %v3488_v29 }
 0x248   :  { %2670 = vmatprep.subr.mxu1 %v3323_v0 }
 0x249   :  { %2671 = vmatpush3.msra.mxu1 %v3496_v31 }
 0x24a   :  { %2710 = vmatprep.subr.mxu1 %v3323_v0  ;;  %2673 = vmatmul.mubr.f32.vlgmr.msra.gmra.mxu1 %v1902_v60 }
 0x24b   :  { %2711 = vmatpush3.msra.mxu1 %v3509_v34  ;;  %2742 = vmatprep.mubr.msk.f32.mxu1 %vm3324_vm0, %v3323_v0 }
 0x24c   :  { %2712 = vmatprep.subr.mxu1 %v3323_v0 }
 0x24d   :  { %2713 = vmatpush3.msra.mxu1 %v3513_v35 }
 0x24e   :  { %2714 = vmatprep.subr.mxu1 %v3323_v0 }
 0x24f   :  { %2715 = vmatpush3.msra.mxu1 %v3519_v36 }
 0x250   :  { %2716 = vmatprep.subr.mxu1 %v3323_v0 }
 0x251   :  { %2717 = vmatpush3.msra.mxu1 %v3525_v37 }
 0x252   :  { %2718 = vmatprep.subr.mxu1 %v3323_v0 }
 0x253   :  { %2719 = vmatpush3.msra.mxu1 %v3532_v38 }
 0x254   :  { %2720 = vmatprep.subr.mxu1 %v3323_v0 }
 0x255   :  { %2721 = vmatpush3.msra.mxu1 %v3538_v39 }
 0x256   :  { %2722 = vmatprep.subr.mxu1 %v3323_v0 }
 0x257   :  { %2723 = vmatpush3.msra.mxu1 %v3544_v40 }
 0x258   :  { %2724 = vmatprep.subr.mxu1 %v3323_v0 }
 0x259   :  { %2725 = vmatpush3.msra.mxu1 %v3576_v41 }
 0x25a   :  { %2726 = vmatprep.subr.mxu1 %v3323_v0 }
 0x25b   :  { %2727 = vmatpush3.msra.mxu1 %v3580_v42 }
 0x25c   :  { %2728 = vmatprep.subr.mxu1 %v3323_v0 }
 0x25d   :  { %2729 = vmatpush3.msra.mxu1 %v3584_v43 }
 0x25e   :  { %2730 = vmatprep.subr.mxu1 %v3323_v0 }
 0x25f   :  { %2731 = vmatpush3.msra.mxu1 %v3588_v44 }
 0x260   :  { %2732 = vmatprep.subr.mxu1 %v3323_v0 }
 0x261   :  { %2733 = vmatpush3.msra.mxu1 %v3592_v45 }
 0x262   :  { %2734 = vmatprep.subr.mxu1 %v3323_v0 }
 0x263   :  { %2735 = vmatpush3.msra.mxu1 %v3596_v46 }
 0x264   :  { %2736 = vmatprep.subr.mxu1 %v3323_v0 }
 0x265   :  { %2737 = vmatpush3.msra.mxu1 %v3600_v47 }
 0x266   :  { %2738 = vmatprep.subr.mxu1 %v3323_v0 }
 0x267   :  { %2739 = vmatpush3.msra.mxu1 %v3604_v48 }
 0x268   :  { %2740 = vmatprep.subr.mxu1 %v3323_v0 }
 0x269   :  { %2741 = vmatpush3.msra.mxu1 %v3608_v49 }
 0x26a   :  { %2780 = vmatprep.subr.mxu1 %v3323_v0 }
 0x2ca   :  { %v562_v61 = vpop.f32.mrf.mxu1 }
 0x2cb   :  { %v563_v63 = vadd.f32 %v3766_v62, %v562_v61  ;;  %v1908_v61 = vld [vmem:[%s4491_s0 + $0x28] sm:$0xff] }
 0x2cc   :  { %v2534_v33 = vpop.f32.mrf.mxu1 }
 0x2cd   :  { %3178 = vtanh.f32 %v563_v63  ;;  %v4137_v63 = vld [vmem:[#allocation7 + $0x78] sm:$0xff]  ;;  %v4143_v33 = vld [vmem:[#allocation7 + $0x70] sm:$0xff] }
 0x2da   :  { %v3179_v50 = vpop.eup %3178 }
 0x2db   :  { %1898 = vst [vmem:[%s4497_s6 + $0x8] sm:$0xff] %v3179_v50  ;;  %v4147_v50 = vld [vmem:[#allocation7 + $0x68] sm:$0xff] }
 0x2ea   :  { %v707_v53 = vpop.f32.mrf.mxu1 }
 0x2eb   :  { %v711_v54 = vadd.f32 %v707_v53, %v638_v52  ;;  %v4151_v52 = vld [vmem:[#allocation7 + $0x60] sm:$0xff]  ;;  %v4155_v53 = vld [vmem:[#allocation7 + $0x58] sm:$0xff] }
 0x2ec   :  { %v2604_v55 = vpop.f32.mrf.mxu1 }
 0x2ed   :  { %3180 = vtanh.f32 %v711_v54  ;;  %v4159_v54 = vld [vmem:[#allocation7 + $0x50] sm:$0xff]  ;;  %v4163_v55 = vld [vmem:[#allocation7 + $0x48] sm:$0xff] }
 0x2fa   :  { %v3181_v56 = vpop.eup %3180 }
 0x2fb   :  { %1900 = vst [vmem:[%s4498_s7 + $0x10] sm:$0xff] %v3181_v56  ;;  %2638 = vmatmul.mubr.f32.vlgmr.msra.gmra.mxu0 %v3181_v56 }
 0x2fc   :  { %2676 = vmatpush3.msra.mxu0 %v3382_v2  ;;  %2707 = vmatprep.mubr.msk.f32.mxu0 %vm3324_vm0, %v3323_v0 }
 0x2fd   :  { %2677 = vmatprep.subr.mxu0 %v3323_v0 }
 0x2fe   :  { %2678 = vmatpush3.msra.mxu0 %v3388_v4 }
 0x2ff   :  { %2679 = vmatprep.subr.mxu0 %v3323_v0 }
 0x300   :  { %2680 = vmatpush3.msra.mxu0 %v3394_v6 }
 0x301   :  { %2681 = vmatprep.subr.mxu0 %v3323_v0 }
 0x302   :  { %2682 = vmatpush3.msra.mxu0 %v3402_v8 }
 0x303   :  { %2683 = vmatprep.subr.mxu0 %v3323_v0 }
 0x304   :  { %2684 = vmatpush3.msra.mxu0 %v3410_v10 }
 0x305   :  { %2685 = vmatprep.subr.mxu0 %v3323_v0 }
 0x306   :  { %2686 = vmatpush3.msra.mxu0 %v3418_v12 }
 0x307   :  { %2687 = vmatprep.subr.mxu0 %v3323_v0 }
 0x308   :  { %2688 = vmatpush3.msra.mxu0 %v3426_v14  ;;  %v4008_v14 = vld [vmem:[#allocation5 + $0x70] sm:$0xff] }
 0x309   :  { %2689 = vmatprep.subr.mxu0 %v3323_v0 }
 0x30a   :  { %2690 = vmatpush3.msra.mxu0 %v3434_v16  ;;  %v4016_v16 = vld [vmem:[#allocation5 + $0x60] sm:$0xff] }
 0x30b   :  { %2691 = vmatprep.subr.mxu0 %v3323_v0 }
 0x30c   :  { %2692 = vmatpush3.msra.mxu0 %v3442_v18  ;;  %v4024_v18 = vld [vmem:[#allocation5 + $0x50] sm:$0xff] }
 0x30d   :  { %2693 = vmatprep.subr.mxu0 %v3323_v0 }
 0x30e   :  { %2694 = vmatpush3.msra.mxu0 %v3450_v20  ;;  %v4032_v20 = vld [vmem:[#allocation5 + $0x40] sm:$0xff] }
 0x30f   :  { %2695 = vmatprep.subr.mxu0 %v3323_v0 }
 0x310   :  { %2696 = vmatpush3.msra.mxu0 %v3458_v22  ;;  %v4040_v22 = vld [vmem:[#allocation5 + $0x30] sm:$0xff] }
 0x311   :  { %2697 = vmatprep.subr.mxu0 %v3323_v0 }
 0x312   :  { %2698 = vmatpush3.msra.mxu0 %v3466_v24  ;;  %v4048_v24 = vld [vmem:[#allocation5 + $0x20] sm:$0xff] }
 0x313   :  { %2699 = vmatprep.subr.mxu0 %v3323_v0 }
 0x314   :  { %2700 = vmatpush3.msra.mxu0 %v3474_v26  ;;  %v4056_v26 = vld [vmem:[#allocation5 + $0x10] sm:$0xff] }
 0x315   :  { %2701 = vmatprep.subr.mxu0 %v3323_v0 }
 0x316   :  { %2702 = vmatpush3.msra.mxu0 %v3482_v28  ;;  %v4064_v28 = vld [vmem:[#allocation5] sm:$0xff] }
 0x317   :  { %2703 = vmatprep.subr.mxu0 %v3323_v0 }
 0x318   :  { %2704 = vmatpush3.msra.mxu0 %v3490_v30  ;;  %v4074_v30 = vld [vmem:[#allocation3 + $0x70] sm:$0xff] }
 0x319   :  { %2705 = vmatprep.subr.mxu0 %v3323_v0 }
 0x31a   :  { %2706 = vmatpush3.msra.mxu0 %v3498_v32  ;;  %v4082_v32 = vld [vmem:[#allocation3 + $0x60] sm:$0xff] }
 0x31b   :  { %2708 = vmatmul.mubr.f32.vlgmr.msra.gmra.mxu0 %v3181_v56  ;;  %2745 = vmatprep.subr.mxu0 %v3323_v0  ;;  %v4167_v56 = vld [vmem:[#allocation7 + $0x40] sm:$0xff] }
 0x31c   :  { %2746 = vmatpush3.msra.mxu0 %v3380_v1  ;;  %2777 = vmatprep.mubr.msk.f32.mxu0 %vm3324_vm0, %v3323_v0  ;;  %v856_v1 = vpop.f32.mrf.mxu1 }
 0x31d   :  { %2747 = vmatprep.subr.mxu0 %v3323_v0  ;;  %v857_v8 = vadd.f32 %v3652_v51, %v856_v1  ;;  %v4171_v1 = vld [vmem:[#allocation7 + $0x38] sm:$0xff] }
 0x31e   :  { %2748 = vmatpush3.msra.mxu0 %v3384_v3  ;;  %v2674_v2 = vpop.f32.mrf.mxu1  ;;  %v1905_v3 = vld [vmem:[%s4491_s0 + $0x20] sm:$0xff] }
 0x31f   :  { %2749 = vmatprep.subr.mxu0 %v3323_v0  ;;  %v4175_v2 = vld [vmem:[#allocation7 + $0x30] sm:$0xff] }
 0x320   :  { %2750 = vmatpush3.msra.mxu0 %v3392_v5 }
 0x321   :  { %2751 = vmatprep.subr.mxu0 %v3323_v0 }
 0x322   :  { %2752 = vmatpush3.msra.mxu0 %v3400_v7 }
 0x323   :  { %2753 = vmatprep.subr.mxu0 %v3323_v0 }
 0x324   :  { %2754 = vmatpush3.msra.mxu0 %v3408_v9 }
 0x325   :  { %2755 = vmatprep.subr.mxu0 %v3323_v0 }
 0x326   :  { %2756 = vmatpush3.msra.mxu0 %v3416_v11 }
 0x327   :  { %2757 = vmatprep.subr.mxu0 %v3323_v0 }
 0x328   :  { %2758 = vmatpush3.msra.mxu0 %v3424_v13  ;;  %v4002_v13 = vld [vmem:[#allocation5 + $0x78] sm:$0xff] }
 0x329   :  { %2759 = vmatprep.subr.mxu0 %v3323_v0 }
 0x32a   :  { %2760 = vmatpush3.msra.mxu0 %v3432_v15  ;;  %v4012_v15 = vld [vmem:[#allocation5 + $0x68] sm:$0xff] }
 0x32b   :  { %2761 = vmatprep.subr.mxu0 %v3323_v0 }
 0x32c   :  { %2762 = vmatpush3.msra.mxu0 %v3440_v17  ;;  %v4020_v17 = vld [vmem:[#allocation5 + $0x58] sm:$0xff] }
 0x32d   :  { %2763 = vmatprep.subr.mxu0 %v3323_v0 }
 0x32e   :  { %2764 = vmatpush3.msra.mxu0 %v3448_v19  ;;  %v4028_v19 = vld [vmem:[#allocation5 + $0x48] sm:$0xff] }
 0x32f   :  { %2765 = vmatprep.subr.mxu0 %v3323_v0 }
 0x330   :  { %2766 = vmatpush3.msra.mxu0 %v3456_v21  ;;  %v4036_v21 = vld [vmem:[#allocation5 + $0x38] sm:$0xff] }
 0x331   :  { %2767 = vmatprep.subr.mxu0 %v3323_v0 }
 0x332   :  { %2768 = vmatpush3.msra.mxu0 %v3464_v23  ;;  %v4044_v23 = vld [vmem:[#allocation5 + $0x28] sm:$0xff] }
 0x333   :  { %2769 = vmatprep.subr.mxu0 %v3323_v0 }
 0x334   :  { %2770 = vmatpush3.msra.mxu0 %v3472_v25  ;;  %v4052_v25 = vld [vmem:[#allocation5 + $0x18] sm:$0xff] }
 0x335   :  { %2771 = vmatprep.subr.mxu0 %v3323_v0 }
 0x336   :  { %2772 = vmatpush3.msra.mxu0 %v3480_v27  ;;  %v4060_v27 = vld [vmem:[#allocation5 + $0x8] sm:$0xff] }
 0x337   :  { %2773 = vmatprep.subr.mxu0 %v3323_v0 }
 0x338   :  { %2774 = vmatpush3.msra.mxu0 %v3488_v29  ;;  %v4068_v29 = vld [vmem:[#allocation3 + $0x78] sm:$0xff] }
 0x339   :  { %2775 = vmatprep.subr.mxu0 %v3323_v0 }
 0x33a   :  { %2776 = vmatpush3.msra.mxu0 %v3496_v31  ;;  %v4078_v31 = vld [vmem:[#allocation3 + $0x68] sm:$0xff] }
 0x33b   :  { %2815 = vmatprep.subr.mxu0 %v3323_v0  ;;  %2778 = vmatmul.mubr.f32.vlgmr.msra.gmra.mxu0 %v1905_v3 }
 0x33c   :  { %2816 = vmatpush3.msra.mxu0 %v3509_v34  ;;  %2847 = vmatprep.mubr.msk.f32.mxu0 %vm3324_vm0, %v3323_v0  ;;  %v4086_v34 = vld [vmem:[#allocation3 + $0x58] sm:$0xff] }
 0x33d   :  { %2817 = vmatprep.subr.mxu0 %v3323_v0 }
 0x33e   :  { %2818 = vmatpush3.msra.mxu0 %v3513_v35  ;;  %v4090_v35 = vld [vmem:[#allocation3 + $0x50] sm:$0xff] }
 0x33f   :  { %2819 = vmatprep.subr.mxu0 %v3323_v0 }
 0x340   :  { %2820 = vmatpush3.msra.mxu0 %v3519_v36  ;;  %v4094_v36 = vld [vmem:[#allocation3 + $0x48] sm:$0xff] }
 0x341   :  { %2821 = vmatprep.subr.mxu0 %v3323_v0 }
 0x342   :  { %2822 = vmatpush3.msra.mxu0 %v3525_v37  ;;  %v4098_v37 = vld [vmem:[#allocation3 + $0x40] sm:$0xff] }
 0x343   :  { %2823 = vmatprep.subr.mxu0 %v3323_v0 }
 0x344   :  { %2824 = vmatpush3.msra.mxu0 %v3532_v38  ;;  %v4102_v38 = vld [vmem:[#allocation3 + $0x38] sm:$0xff] }
 0x345   :  { %2825 = vmatprep.subr.mxu0 %v3323_v0 }
 0x346   :  { %2826 = vmatpush3.msra.mxu0 %v3538_v39  ;;  %v4106_v39 = vld [vmem:[#allocation3 + $0x30] sm:$0xff] }
 0x347   :  { %2827 = vmatprep.subr.mxu0 %v3323_v0 }
 0x348   :  { %2828 = vmatpush3.msra.mxu0 %v3544_v40  ;;  %v4110_v40 = vld [vmem:[#allocation3 + $0x28] sm:$0xff] }
 0x349   :  { %2829 = vmatprep.subr.mxu0 %v3323_v0 }
 0x34a   :  { %2830 = vmatpush3.msra.mxu0 %v3576_v41  ;;  %v4114_v41 = vld [vmem:[#allocation3 + $0x20] sm:$0xff] }
 0x34b   :  { %2831 = vmatprep.subr.mxu0 %v3323_v0 }
 0x34c   :  { %2832 = vmatpush3.msra.mxu0 %v3580_v42  ;;  %v4118_v42 = vld [vmem:[#allocation3 + $0x18] sm:$0xff] }
 0x34d   :  { %2833 = vmatprep.subr.mxu0 %v3323_v0 }
 0x34e   :  { %2834 = vmatpush3.msra.mxu0 %v3584_v43  ;;  %v4122_v43 = vld [vmem:[#allocation3 + $0x10] sm:$0xff] }
 0x34f   :  { %2835 = vmatprep.subr.mxu0 %v3323_v0 }
 0x350   :  { %2836 = vmatpush3.msra.mxu0 %v3588_v44 }
 0x351   :  { %2837 = vmatprep.subr.mxu0 %v3323_v0 }
 0x352   :  { %2838 = vmatpush3.msra.mxu0 %v3592_v45 }
 0x353   :  { %2839 = vmatprep.subr.mxu0 %v3323_v0 }
 0x354   :  { %2840 = vmatpush3.msra.mxu0 %v3596_v46 }
 0x355   :  { %2841 = vmatprep.subr.mxu0 %v3323_v0 }
 0x356   :  { %2842 = vmatpush3.msra.mxu0 %v3600_v47 }
 0x357   :  { %2843 = vmatprep.subr.mxu0 %v3323_v0 }
 0x358   :  { %2844 = vmatpush3.msra.mxu0 %v3604_v48 }
 0x359   :  { %2845 = vmatprep.subr.mxu0 %v3323_v0 }
 0x35a   :  { %2846 = vmatpush3.msra.mxu0 %v3608_v49 }
 0x35b   :  { %2885 = vmatprep.subr.mxu0 %v3323_v0 }
 0x3bb   :  { %v781_v4 = vpop.f32.mrf.mxu0 }
 0x3bc   :  { %v782_v5 = vadd.f32 %v3766_v62, %v781_v4 }
 0x3bd   :  { %v2639_v6 = vpop.f32.mrf.mxu0 }
 0x3be   :  { %3182 = vtanh.f32 %v782_v5 }
 0x3cb   :  { %v3183_v7 = vpop.eup %3182 }
 0x3cc   :  { %1901 = vst [vmem:[%s4497_s6 + $0x10] sm:$0xff] %v3183_v7  ;;  %v1911_v7 = vld [vmem:[%s4491_s0 + $0x30] sm:$0xff] }
 0x3db   :  { %v926_v9 = vpop.f32.mrf.mxu0 }
 0x3dc   :  { %v930_v10 = vadd.f32 %v926_v9, %v857_v8  ;;  %v4292_v8 = vld [vmem:[#allocation7 + $0x28] sm:$0xff]  ;;  %v4296_v9 = vld [vmem:[#allocation7 + $0x20] sm:$0xff] }
 0x3dd   :  { %v2709_v11 = vpop.f32.mrf.mxu0 }
 0x3de   :  { %3184 = vtanh.f32 %v930_v10  ;;  %v4300_v10 = vld [vmem:[#allocation7 + $0x18] sm:$0xff]  ;;  %v4304_v11 = vld [vmem:[#allocation7 + $0x10] sm:$0xff] }
 0x3eb   :  { %v3185_v12 = vpop.eup %3184 }
 0x3ec   :  { %1903 = vst [vmem:[%s4498_s7 + $0x18] sm:$0xff] %v3185_v12  ;;  %2743 = vmatmul.mubr.f32.vlgmr.msra.gmra.mxu1 %v3185_v12 }
 0x3ed   :  { %2781 = vmatpush3.msra.mxu1 %v4002_v13  ;;  %2812 = vmatprep.mubr.msk.f32.mxu1 %vm3324_vm0, %v3323_v0 }
 0x3ee   :  { %2782 = vmatprep.subr.mxu1 %v3323_v0 }
 0x3ef   :  { %2783 = vmatpush3.msra.mxu1 %v4008_v14 }
 0x3f0   :  { %2784 = vmatprep.subr.mxu1 %v3323_v0 }
 0x3f1   :  { %2785 = vmatpush3.msra.mxu1 %v4012_v15 }
 0x3f2   :  { %2786 = vmatprep.subr.mxu1 %v3323_v0 }
 0x3f3   :  { %2787 = vmatpush3.msra.mxu1 %v4016_v16 }
 0x3f4   :  { %2788 = vmatprep.subr.mxu1 %v3323_v0 }
 0x3f5   :  { %2789 = vmatpush3.msra.mxu1 %v4020_v17 }
 0x3f6   :  { %2790 = vmatprep.subr.mxu1 %v3323_v0 }
 0x3f7   :  { %2791 = vmatpush3.msra.mxu1 %v4024_v18 }
 0x3f8   :  { %2792 = vmatprep.subr.mxu1 %v3323_v0 }
 0x3f9   :  { %2793 = vmatpush3.msra.mxu1 %v4028_v19 }
 0x3fa   :  { %2794 = vmatprep.subr.mxu1 %v3323_v0 }
 0x3fb   :  { %2795 = vmatpush3.msra.mxu1 %v4032_v20  ;;  %v1075_v59 = vpop.f32.mrf.mxu0 }
 0x3fc   :  { %2796 = vmatprep.subr.mxu1 %v3323_v0 }
 0x3fd   :  { %2797 = vmatpush3.msra.mxu1 %v4036_v21  ;;  %v2779_v60 = vpop.f32.mrf.mxu0 }
 0x3fe   :  { %2798 = vmatprep.subr.mxu1 %v3323_v0 }
 0x3ff   :  { %2799 = vmatpush3.msra.mxu1 %v4040_v22 }
 0x400   :  { %2800 = vmatprep.subr.mxu1 %v3323_v0 }
 0x401   :  { %2801 = vmatpush3.msra.mxu1 %v4044_v23 }
 0x402   :  { %2802 = vmatprep.subr.mxu1 %v3323_v0 }
 0x403   :  { %2803 = vmatpush3.msra.mxu1 %v4048_v24 }
 0x404   :  { %2804 = vmatprep.subr.mxu1 %v3323_v0 }
 0x405   :  { %2805 = vmatpush3.msra.mxu1 %v4052_v25 }
 0x406   :  { %2806 = vmatprep.subr.mxu1 %v3323_v0 }
 0x407   :  { %2807 = vmatpush3.msra.mxu1 %v4056_v26 }
 0x408   :  { %2808 = vmatprep.subr.mxu1 %v3323_v0 }
 0x409   :  { %2809 = vmatpush3.msra.mxu1 %v4060_v27 }
 0x40a   :  { %2810 = vmatprep.subr.mxu1 %v3323_v0 }
 0x40b   :  { %2811 = vmatpush3.msra.mxu1 %v4064_v28 }
 0x40c   :  { %2813 = vmatmul.mubr.f32.vlgmr.msra.gmra.mxu1 %v3185_v12  ;;  %2850 = vmatprep.subr.mxu1 %v3323_v0  ;;  %v4308_v12 = vld [vmem:[#allocation7 + $0x8] sm:$0xff] }
 0x40d   :  { %2851 = vmatpush3.msra.mxu1 %v4068_v29  ;;  %2882 = vmatprep.mubr.msk.f32.mxu1 %vm3324_vm0, %v3323_v0 }
 0x40e   :  { %2852 = vmatprep.subr.mxu1 %v3323_v0 }
 0x40f   :  { %2853 = vmatpush3.msra.mxu1 %v4074_v30 }
 0x410   :  { %2854 = vmatprep.subr.mxu1 %v3323_v0 }
 0x411   :  { %2855 = vmatpush3.msra.mxu1 %v4078_v31 }
 0x412   :  { %2856 = vmatprep.subr.mxu1 %v3323_v0 }
 0x413   :  { %2857 = vmatpush3.msra.mxu1 %v4082_v32 }
 0x414   :  { %2858 = vmatprep.subr.mxu1 %v3323_v0 }
 0x415   :  { %2859 = vmatpush3.msra.mxu1 %v4086_v34 }
 0x416   :  { %2860 = vmatprep.subr.mxu1 %v3323_v0 }
 0x417   :  { %2861 = vmatpush3.msra.mxu1 %v4090_v35 }
 0x418   :  { %2862 = vmatprep.subr.mxu1 %v3323_v0 }
 0x419   :  { %2863 = vmatpush3.msra.mxu1 %v4094_v36 }
 0x41a   :  { %2864 = vmatprep.subr.mxu1 %v3323_v0 }
 0x41b   :  { %2865 = vmatpush3.msra.mxu1 %v4098_v37 }
 0x41c   :  { %2866 = vmatprep.subr.mxu1 %v3323_v0 }
 0x41d   :  { %2867 = vmatpush3.msra.mxu1 %v4102_v38 }
 0x41e   :  { %2868 = vmatprep.subr.mxu1 %v3323_v0 }
 0x41f   :  { %2869 = vmatpush3.msra.mxu1 %v4106_v39 }
 0x420   :  { %2870 = vmatprep.subr.mxu1 %v3323_v0 }
 0x421   :  { %2871 = vmatpush3.msra.mxu1 %v4110_v40 }
 0x422   :  { %2872 = vmatprep.subr.mxu1 %v3323_v0 }
 0x423   :  { %2873 = vmatpush3.msra.mxu1 %v4114_v41 }
 0x424   :  { %2874 = vmatprep.subr.mxu1 %v3323_v0 }
 0x425   :  { %2875 = vmatpush3.msra.mxu1 %v4118_v42 }
 0x426   :  { %2876 = vmatprep.subr.mxu1 %v3323_v0 }
 0x427   :  { %2877 = vmatpush3.msra.mxu1 %v4122_v43 }
 0x428   :  { %2878 = vmatprep.subr.mxu1 %v3323_v0 }
 0x429   :  { %2879 = vmatpush3.msra.mxu1 %v4126_v57 }
 0x42a   :  { %2880 = vmatprep.subr.mxu1 %v3323_v0 }
 0x42b   :  { %2881 = vmatpush3.msra.mxu1 %v4130_v58 }
 0x42c   :  { %2920 = vmatprep.subr.mxu1 %v3323_v0  ;;  %2883 = vmatmul.mubr.f32.vlgmr.msra.gmra.mxu1 %v1908_v61 }
 0x42d   :  { %2921 = vmatpush3.msra.mxu1 %v4137_v63  ;;  %2952 = vmatprep.mubr.msk.f32.mxu1 %vm3324_vm0, %v3323_v0 }
 0x42e   :  { %2922 = vmatprep.subr.mxu1 %v3323_v0 }
 0x42f   :  { %2923 = vmatpush3.msra.mxu1 %v4143_v33 }
 0x430   :  { %2924 = vmatprep.subr.mxu1 %v3323_v0 }
 0x431   :  { %2925 = vmatpush3.msra.mxu1 %v4147_v50 }
 0x432   :  { %2926 = vmatprep.subr.mxu1 %v3323_v0 }
 0x433   :  { %2927 = vmatpush3.msra.mxu1 %v4151_v52 }
 0x434   :  { %2928 = vmatprep.subr.mxu1 %v3323_v0 }
 0x435   :  { %2929 = vmatpush3.msra.mxu1 %v4155_v53 }
 0x436   :  { %2930 = vmatprep.subr.mxu1 %v3323_v0 }
 0x437   :  { %2931 = vmatpush3.msra.mxu1 %v4159_v54 }
 0x438   :  { %2932 = vmatprep.subr.mxu1 %v3323_v0 }
 0x439   :  { %2933 = vmatpush3.msra.mxu1 %v4163_v55 }
 0x43a   :  { %2934 = vmatprep.subr.mxu1 %v3323_v0 }
 0x43b   :  { %2935 = vmatpush3.msra.mxu1 %v4167_v56 }
 0x43c   :  { %2936 = vmatprep.subr.mxu1 %v3323_v0 }
 0x43d   :  { %2937 = vmatpush3.msra.mxu1 %v4171_v1 }
 0x43e   :  { %2938 = vmatprep.subr.mxu1 %v3323_v0 }
 0x43f   :  { %2939 = vmatpush3.msra.mxu1 %v4175_v2 }
 0x440   :  { %2940 = vmatprep.subr.mxu1 %v3323_v0 }
 0x441   :  { %2941 = vmatpush3.msra.mxu1 %v3588_v44 }
 0x442   :  { %2942 = vmatprep.subr.mxu1 %v3323_v0 }
 0x443   :  { %2943 = vmatpush3.msra.mxu1 %v3592_v45 }
 0x444   :  { %2944 = vmatprep.subr.mxu1 %v3323_v0 }
 0x445   :  { %2945 = vmatpush3.msra.mxu1 %v3596_v46 }
 0x446   :  { %2946 = vmatprep.subr.mxu1 %v3323_v0 }
 0x447   :  { %2947 = vmatpush3.msra.mxu1 %v3600_v47  ;;  %v1076_v47 = vadd.f32 %v3652_v51, %v1075_v59  ;;  %v4312_v59 = vld [vmem:[#allocation7] sm:$0xff] }
 0x448   :  { %2948 = vmatprep.subr.mxu1 %v3323_v0 }
 0x449   :  { %2949 = vmatpush3.msra.mxu1 %v3604_v48 }
 0x44a   :  { %2950 = vmatprep.subr.mxu1 %v3323_v0 }
 0x44b   :  { %2951 = vmatpush3.msra.mxu1 %v3608_v49 }
 0x44c   :  { %2990 = vmatprep.subr.mxu1 %v3323_v0 }
 0x4ac   :  { %v1000_v44 = vpop.f32.mrf.mxu1 }
 0x4ad   :  { %v1001_v45 = vadd.f32 %v3766_v62, %v1000_v44 }
 0x4ae   :  { %v2744_v3 = vpop.f32.mrf.mxu1 }
 0x4af   :  { %3186 = vtanh.f32 %v1001_v45  ;;  %v4323_v3 = vld [vmem:[%s4493_s2] ss:$0 sm:$0xff] }
 0x4bc   :  { %v3187_v46 = vpop.eup %3186 }
 0x4bd   :  { %1904 = vst [vmem:[%s4497_s6 + $0x18] sm:$0xff] %v3187_v46 }
 0x4cc   :  { %v1145_v4 = vpop.f32.mrf.mxu1 }
 0x4cd   :  { %v1149_v48 = vadd.f32 %v1145_v4, %v1076_v47 }
 0x4ce   :  { %v2814_v5 = vpop.f32.mrf.mxu1 }
 0x4cf   :  { %3188 = vtanh.f32 %v1149_v48 }
 0x4dc   :  { %v3189_v6 = vpop.eup %3188 }
 0x4dd   :  { %1906 = vst [vmem:[%s4498_s7 + $0x20] sm:$0xff] %v3189_v6  ;;  %2848 = vmatmul.mubr.f32.vlgmr.msra.gmra.mxu0 %v3189_v6 }
 0x4de   :  { %2886 = vmatpush3.msra.mxu0 %v4002_v13  ;;  %2917 = vmatprep.mubr.msk.f32.mxu0 %vm3324_vm0, %v3323_v0 }
 0x4df   :  { %2887 = vmatprep.subr.mxu0 %v3323_v0 }
 0x4e0   :  { %2888 = vmatpush3.msra.mxu0 %v4008_v14 }
 0x4e1   :  { %2889 = vmatprep.subr.mxu0 %v3323_v0 }
 0x4e2   :  { %2890 = vmatpush3.msra.mxu0 %v4012_v15 }
 0x4e3   :  { %2891 = vmatprep.subr.mxu0 %v3323_v0 }
 0x4e4   :  { %2892 = vmatpush3.msra.mxu0 %v4016_v16 }
 0x4e5   :  { %2893 = vmatprep.subr.mxu0 %v3323_v0 }
 0x4e6   :  { %2894 = vmatpush3.msra.mxu0 %v4020_v17 }
 0x4e7   :  { %2895 = vmatprep.subr.mxu0 %v3323_v0 }
 0x4e8   :  { %2896 = vmatpush3.msra.mxu0 %v4024_v18 }
 0x4e9   :  { %2897 = vmatprep.subr.mxu0 %v3323_v0 }
 0x4ea   :  { %2898 = vmatpush3.msra.mxu0 %v4028_v19 }
 0x4eb   :  { %2899 = vmatprep.subr.mxu0 %v3323_v0 }
 0x4ec   :  { %2900 = vmatpush3.msra.mxu0 %v4032_v20  ;;  %v1294_v49 = vpop.f32.mrf.mxu1 }
 0x4ed   :  { %2901 = vmatprep.subr.mxu0 %v3323_v0  ;;  %v1295_v46 = vadd.f32 %v4323_v3, %v1294_v49 }
 0x4ee   :  { %2902 = vmatpush3.msra.mxu0 %v4036_v21  ;;  %v2884_v51 = vpop.f32.mrf.mxu1 }
 0x4ef   :  { %2903 = vmatprep.subr.mxu0 %v3323_v0 }
 0x4f0   :  { %2904 = vmatpush3.msra.mxu0 %v4040_v22 }
 0x4f1   :  { %2905 = vmatprep.subr.mxu0 %v3323_v0 }
 0x4f2   :  { %2906 = vmatpush3.msra.mxu0 %v4044_v23 }
 0x4f3   :  { %2907 = vmatprep.subr.mxu0 %v3323_v0 }
 0x4f4   :  { %2908 = vmatpush3.msra.mxu0 %v4048_v24 }
 0x4f5   :  { %2909 = vmatprep.subr.mxu0 %v3323_v0 }
 0x4f6   :  { %2910 = vmatpush3.msra.mxu0 %v4052_v25 }
 0x4f7   :  { %2911 = vmatprep.subr.mxu0 %v3323_v0 }
 0x4f8   :  { %2912 = vmatpush3.msra.mxu0 %v4056_v26 }
 0x4f9   :  { %2913 = vmatprep.subr.mxu0 %v3323_v0 }
 0x4fa   :  { %2914 = vmatpush3.msra.mxu0 %v4060_v27 }
 0x4fb   :  { %2915 = vmatprep.subr.mxu0 %v3323_v0 }
 0x4fc   :  { %2916 = vmatpush3.msra.mxu0 %v4064_v28 }
 0x4fd   :  { %2918 = vmatmul.mubr.f32.vlgmr.msra.gmra.mxu0 %v3189_v6  ;;  %2955 = vmatprep.subr.mxu0 %v3323_v0 }
 0x4fe   :  { %2956 = vmatpush3.msra.mxu0 %v4068_v29  ;;  %2987 = vmatprep.mubr.msk.f32.mxu0 %vm3324_vm0, %v3323_v0 }
 0x4ff   :  { %2957 = vmatprep.subr.mxu0 %v3323_v0 }
 0x500   :  { %2958 = vmatpush3.msra.mxu0 %v4074_v30 }
 0x501   :  { %2959 = vmatprep.subr.mxu0 %v3323_v0 }
 0x502   :  { %2960 = vmatpush3.msra.mxu0 %v4078_v31 }
 0x503   :  { %2961 = vmatprep.subr.mxu0 %v3323_v0 }
 0x504   :  { %2962 = vmatpush3.msra.mxu0 %v4082_v32 }
 0x505   :  { %2963 = vmatprep.subr.mxu0 %v3323_v0 }
 0x506   :  { %2964 = vmatpush3.msra.mxu0 %v4086_v34 }
 0x507   :  { %2965 = vmatprep.subr.mxu0 %v3323_v0 }
 0x508   :  { %2966 = vmatpush3.msra.mxu0 %v4090_v35 }
 0x509   :  { %2967 = vmatprep.subr.mxu0 %v3323_v0 }
 0x50a   :  { %2968 = vmatpush3.msra.mxu0 %v4094_v36 }
 0x50b   :  { %2969 = vmatprep.subr.mxu0 %v3323_v0 }
 0x50c   :  { %2970 = vmatpush3.msra.mxu0 %v4098_v37 }
 0x50d   :  { %2971 = vmatprep.subr.mxu0 %v3323_v0 }
 0x50e   :  { %2972 = vmatpush3.msra.mxu0 %v4102_v38 }
 0x50f   :  { %2973 = vmatprep.subr.mxu0 %v3323_v0 }
 0x510   :  { %2974 = vmatpush3.msra.mxu0 %v4106_v39 }
 0x511   :  { %2975 = vmatprep.subr.mxu0 %v3323_v0 }
 0x512   :  { %2976 = vmatpush3.msra.mxu0 %v4110_v40 }
 0x513   :  { %2977 = vmatprep.subr.mxu0 %v3323_v0 }
 0x514   :  { %2978 = vmatpush3.msra.mxu0 %v4114_v41 }
 0x515   :  { %2979 = vmatprep.subr.mxu0 %v3323_v0 }
 0x516   :  { %2980 = vmatpush3.msra.mxu0 %v4118_v42 }
 0x517   :  { %2981 = vmatprep.subr.mxu0 %v3323_v0 }
 0x518   :  { %2982 = vmatpush3.msra.mxu0 %v4122_v43 }
 0x519   :  { %2983 = vmatprep.subr.mxu0 %v3323_v0 }
 0x51a   :  { %2984 = vmatpush3.msra.mxu0 %v4126_v57 }
 0x51b   :  { %2985 = vmatprep.subr.mxu0 %v3323_v0 }
 0x51c   :  { %2986 = vmatpush3.msra.mxu0 %v4130_v58 }
 0x51d   :  { %3025 = vmatprep.subr.mxu0 %v3323_v0  ;;  %2988 = vmatmul.mubr.f32.vlgmr.msra.gmra.mxu0 %v1911_v7 }
 0x51e   :  { %3026 = vmatpush3.msra.mxu0 %v4137_v63  ;;  %3057 = vmatprep.mubr.msk.f32.mxu0 %vm3324_vm0, %v3323_v0 }
 0x51f   :  { %3027 = vmatprep.subr.mxu0 %v3323_v0 }
 0x520   :  { %3028 = vmatpush3.msra.mxu0 %v4143_v33 }
 0x521   :  { %3029 = vmatprep.subr.mxu0 %v3323_v0 }
 0x522   :  { %3030 = vmatpush3.msra.mxu0 %v4147_v50 }
 0x523   :  { %3031 = vmatprep.subr.mxu0 %v3323_v0 }
 0x524   :  { %3032 = vmatpush3.msra.mxu0 %v4151_v52 }
 0x525   :  { %3033 = vmatprep.subr.mxu0 %v3323_v0 }
 0x526   :  { %3034 = vmatpush3.msra.mxu0 %v4155_v53 }
 0x527   :  { %3035 = vmatprep.subr.mxu0 %v3323_v0 }
 0x528   :  { %3036 = vmatpush3.msra.mxu0 %v4159_v54 }
 0x529   :  { %3037 = vmatprep.subr.mxu0 %v3323_v0 }
 0x52a   :  { %3038 = vmatpush3.msra.mxu0 %v4163_v55 }
 0x52b   :  { %3039 = vmatprep.subr.mxu0 %v3323_v0 }
 0x52c   :  { %3040 = vmatpush3.msra.mxu0 %v4167_v56 }
 0x52d   :  { %3041 = vmatprep.subr.mxu0 %v3323_v0 }
 0x52e   :  { %3042 = vmatpush3.msra.mxu0 %v4171_v1 }
 0x52f   :  { %3043 = vmatprep.subr.mxu0 %v3323_v0 }
 0x530   :  { %3044 = vmatpush3.msra.mxu0 %v4175_v2 }
 0x531   :  { %3045 = vmatprep.subr.mxu0 %v3323_v0 }
 0x532   :  { %3046 = vmatpush3.msra.mxu0 %v4292_v8 }
 0x533   :  { %3047 = vmatprep.subr.mxu0 %v3323_v0 }
 0x534   :  { %3048 = vmatpush3.msra.mxu0 %v4296_v9 }
 0x535   :  { %3049 = vmatprep.subr.mxu0 %v3323_v0 }
 0x536   :  { %3050 = vmatpush3.msra.mxu0 %v4300_v10 }
 0x537   :  { %3051 = vmatprep.subr.mxu0 %v3323_v0 }
 0x538   :  { %3052 = vmatpush3.msra.mxu0 %v4304_v11 }
 0x539   :  { %3053 = vmatprep.subr.mxu0 %v3323_v0 }
 0x53a   :  { %3054 = vmatpush3.msra.mxu0 %v4308_v12 }
 0x53b   :  { %3055 = vmatprep.subr.mxu0 %v3323_v0 }
 0x53c   :  { %3056 = vmatpush3.msra.mxu0 %v4312_v59 }
 0x53d   :  { %3095 = vmatprep.subr.mxu0 %v3323_v0 }
 0x59d   :  { %v1219_v60 = vpop.f32.mrf.mxu0 }
 0x59e   :  { %v1220_v61 = vadd.f32 %v3766_v62, %v1219_v60 }
 0x59f   :  { %v2849_v44 = vpop.f32.mrf.mxu0 }
 0x5a0   :  { %3190 = vtanh.f32 %v1220_v61 }
 0x5ad   :  { %v3191_v45 = vpop.eup %3190 }
 0x5ae   :  { %1907 = vst [vmem:[%s4497_s6 + $0x20] sm:$0xff] %v3191_v45 }
 0x5bd   :  { %v1364_v47 = vpop.f32.mrf.mxu0 }
 0x5be   :  { %v1368_v4 = vadd.f32 %v1364_v47, %v1295_v46 }
 0x5bf   :  { %v2919_v48 = vpop.f32.mrf.mxu0 }
 0x5c0   :  { %3192 = vtanh.f32 %v1368_v4 }
 0x5cd   :  { %v3193_v5 = vpop.eup %3192 }
 0x5ce   :  { %1909 = vst [vmem:[%s4498_s7 + $0x28] sm:$0xff] %v3193_v5  ;;  %2953 = vmatmul.mubr.f32.vlgmr.msra.gmra.mxu1 %v3193_v5 }
 0x5cf   :  { %2991 = vmatpush3.msra.mxu1 %v4002_v13  ;;  %3022 = vmatprep.mubr.msk.f32.mxu1 %vm3324_vm0, %v3323_v0 }
 0x5d0   :  { %2992 = vmatprep.subr.mxu1 %v3323_v0 }
 0x5d1   :  { %2993 = vmatpush3.msra.mxu1 %v4008_v14 }
 0x5d2   :  { %2994 = vmatprep.subr.mxu1 %v3323_v0 }
 0x5d3   :  { %2995 = vmatpush3.msra.mxu1 %v4012_v15 }
 0x5d4   :  { %2996 = vmatprep.subr.mxu1 %v3323_v0 }
 0x5d5   :  { %2997 = vmatpush3.msra.mxu1 %v4016_v16 }
 0x5d6   :  { %2998 = vmatprep.subr.mxu1 %v3323_v0 }
 0x5d7   :  { %2999 = vmatpush3.msra.mxu1 %v4020_v17 }
 0x5d8   :  { %3000 = vmatprep.subr.mxu1 %v3323_v0 }
 0x5d9   :  { %3001 = vmatpush3.msra.mxu1 %v4024_v18 }
 0x5da   :  { %3002 = vmatprep.subr.mxu1 %v3323_v0 }
 0x5db   :  { %3003 = vmatpush3.msra.mxu1 %v4028_v19 }
 0x5dc   :  { %3004 = vmatprep.subr.mxu1 %v3323_v0 }
 0x5dd   :  { %3005 = vmatpush3.msra.mxu1 %v4032_v20  ;;  %v1513_v62 = vpop.f32.mrf.mxu0 }
 0x5de   :  { %3006 = vmatprep.subr.mxu1 %v3323_v0 }
 0x5df   :  { %3007 = vmatpush3.msra.mxu1 %v4036_v21 }
 0x5e0   :  { %3008 = vmatprep.subr.mxu1 %v3323_v0 }
 0x5e1   :  { %3009 = vmatpush3.msra.mxu1 %v4040_v22 }
 0x5e2   :  { %3010 = vmatprep.subr.mxu1 %v3323_v0 }
 0x5e3   :  { %3011 = vmatpush3.msra.mxu1 %v4044_v23 }
 0x5e4   :  { %3012 = vmatprep.subr.mxu1 %v3323_v0 }
 0x5e5   :  { %3013 = vmatpush3.msra.mxu1 %v4048_v24 }
 0x5e6   :  { %3014 = vmatprep.subr.mxu1 %v3323_v0 }
 0x5e7   :  { %3015 = vmatpush3.msra.mxu1 %v4052_v25 }
 0x5e8   :  { %3016 = vmatprep.subr.mxu1 %v3323_v0 }
 0x5e9   :  { %3017 = vmatpush3.msra.mxu1 %v4056_v26 }
 0x5ea   :  { %3018 = vmatprep.subr.mxu1 %v3323_v0 }
 0x5eb   :  { %3019 = vmatpush3.msra.mxu1 %v4060_v27 }
 0x5ec   :  { %3020 = vmatprep.subr.mxu1 %v3323_v0 }
 0x5ed   :  { %3021 = vmatpush3.msra.mxu1 %v4064_v28 }
 0x5ee   :  { %3023 = vmatmul.mubr.f32.vlgmr.msra.gmra.mxu1 %v3193_v5  ;;  %3060 = vmatprep.subr.mxu1 %v3323_v0 }
 0x5ef   :  { %3061 = vmatpush3.msra.mxu1 %v4068_v29  ;;  %3092 = vmatprep.mubr.msk.f32.mxu1 %vm3324_vm0, %v3323_v0  ;;  %v2989_v29 = vpop.f32.mrf.mxu0 }
 0x5f0   :  { %3062 = vmatprep.subr.mxu1 %v3323_v0 }
 0x5f1   :  { %3063 = vmatpush3.msra.mxu1 %v4074_v30  ;;  %v1914_v30 = vld [vmem:[%s4491_s0 + $0x38] sm:$0xff] }
 0x5f2   :  { %3064 = vmatprep.subr.mxu1 %v3323_v0 }
 0x5f3   :  { %3065 = vmatpush3.msra.mxu1 %v4078_v31 }
 0x5f4   :  { %3066 = vmatprep.subr.mxu1 %v3323_v0 }
 0x5f5   :  { %3067 = vmatpush3.msra.mxu1 %v4082_v32  ;;  %v4436_v32 = vld [vmem:[%s4496_s5] ss:$0 sm:$0xff] }
 0x5f6   :  { %3068 = vmatprep.subr.mxu1 %v3323_v0 }
 0x5f7   :  { %3069 = vmatpush3.msra.mxu1 %v4086_v34 }
 0x5f8   :  { %3070 = vmatprep.subr.mxu1 %v3323_v0 }
 0x5f9   :  { %3071 = vmatpush3.msra.mxu1 %v4090_v35 }
 0x5fa   :  { %3072 = vmatprep.subr.mxu1 %v3323_v0 }
 0x5fb   :  { %3073 = vmatpush3.msra.mxu1 %v4094_v36 }
 0x5fc   :  { %3074 = vmatprep.subr.mxu1 %v3323_v0 }
 0x5fd   :  { %3075 = vmatpush3.msra.mxu1 %v4098_v37  ;;  %v1514_v37 = vadd.f32 %v4323_v3, %v1513_v62 }
 0x5fe   :  { %3076 = vmatprep.subr.mxu1 %v3323_v0 }
 0x5ff   :  { %3077 = vmatpush3.msra.mxu1 %v4102_v38 }
 0x600   :  { %3078 = vmatprep.subr.mxu1 %v3323_v0 }
 0x601   :  { %3079 = vmatpush3.msra.mxu1 %v4106_v39 }
 0x602   :  { %3080 = vmatprep.subr.mxu1 %v3323_v0 }
 0x603   :  { %3081 = vmatpush3.msra.mxu1 %v4110_v40 }
 0x604   :  { %3082 = vmatprep.subr.mxu1 %v3323_v0 }
 0x605   :  { %3083 = vmatpush3.msra.mxu1 %v4114_v41 }
 0x606   :  { %3084 = vmatprep.subr.mxu1 %v3323_v0 }
 0x607   :  { %3085 = vmatpush3.msra.mxu1 %v4118_v42 }
 0x608   :  { %3086 = vmatprep.subr.mxu1 %v3323_v0 }
 0x609   :  { %3087 = vmatpush3.msra.mxu1 %v4122_v43 }
 0x60a   :  { %3088 = vmatprep.subr.mxu1 %v3323_v0 }
 0x60b   :  { %3089 = vmatpush3.msra.mxu1 %v4126_v57 }
 0x60c   :  { %3090 = vmatprep.subr.mxu1 %v3323_v0 }
 0x60d   :  { %3091 = vmatpush3.msra.mxu1 %v4130_v58 }
 0x60e   :  { %3130 = vmatprep.subr.mxu1 %v3323_v0  ;;  %3093 = vmatmul.mubr.f32.vlgmr.msra.gmra.mxu1 %v1914_v30 }
 0x60f   :  { %3131 = vmatpush3.msra.mxu1 %v4137_v63  ;;  %3162 = vmatprep.mubr.msk.f32.mxu1 %vm3324_vm0, %v3323_v0 }
 0x610   :  { %3132 = vmatprep.subr.mxu1 %v3323_v0 }
 0x611   :  { %3133 = vmatpush3.msra.mxu1 %v4143_v33 }
 0x612   :  { %3134 = vmatprep.subr.mxu1 %v3323_v0 }
 0x613   :  { %3135 = vmatpush3.msra.mxu1 %v4147_v50 }
 0x614   :  { %3136 = vmatprep.subr.mxu1 %v3323_v0 }
 0x615   :  { %3137 = vmatpush3.msra.mxu1 %v4151_v52 }
 0x616   :  { %3138 = vmatprep.subr.mxu1 %v3323_v0 }
 0x617   :  { %3139 = vmatpush3.msra.mxu1 %v4155_v53 }
 0x618   :  { %3140 = vmatprep.subr.mxu1 %v3323_v0 }
 0x619   :  { %3141 = vmatpush3.msra.mxu1 %v4159_v54 }
 0x61a   :  { %3142 = vmatprep.subr.mxu1 %v3323_v0 }
 0x61b   :  { %3143 = vmatpush3.msra.mxu1 %v4163_v55 }
 0x61c   :  { %3144 = vmatprep.subr.mxu1 %v3323_v0 }
 0x61d   :  { %3145 = vmatpush3.msra.mxu1 %v4167_v56 }
 0x61e   :  { %3146 = vmatprep.subr.mxu1 %v3323_v0 }
 0x61f   :  { %3147 = vmatpush3.msra.mxu1 %v4171_v1 }
 0x620   :  { %3148 = vmatprep.subr.mxu1 %v3323_v0 }
 0x621   :  { %3149 = vmatpush3.msra.mxu1 %v4175_v2 }
 0x622   :  { %3150 = vmatprep.subr.mxu1 %v3323_v0 }
 0x623   :  { %3151 = vmatpush3.msra.mxu1 %v4292_v8 }
 0x624   :  { %3152 = vmatprep.subr.mxu1 %v3323_v0 }
 0x625   :  { %3153 = vmatpush3.msra.mxu1 %v4296_v9 }
 0x626   :  { %3154 = vmatprep.subr.mxu1 %v3323_v0 }
 0x627   :  { %3155 = vmatpush3.msra.mxu1 %v4300_v10 }
 0x628   :  { %3156 = vmatprep.subr.mxu1 %v3323_v0 }
 0x629   :  { %3157 = vmatpush3.msra.mxu1 %v4304_v11 }
 0x62a   :  { %3158 = vmatprep.subr.mxu1 %v3323_v0 }
 0x62b   :  { %3159 = vmatpush3.msra.mxu1 %v4308_v12 }
 0x62c   :  { %3160 = vmatprep.subr.mxu1 %v3323_v0 }
 0x62d   :  { %3161 = vmatpush3.msra.mxu1 %v4312_v59 }
 0x68e   :  { %v1438_v31 = vpop.f32.mrf.mxu1 }
 0x68f   :  { %v1439_v34 = vadd.f32 %v4436_v32, %v1438_v31 }
 0x690   :  { %v2954_v35 = vpop.f32.mrf.mxu1 }
 0x691   :  { %3194 = vtanh.f32 %v1439_v34 }
 0x69e   :  { %v3195_v36 = vpop.eup %3194 }
 0x69f   :  { %1910 = vst [vmem:[%s4497_s6 + $0x28] sm:$0xff] %v3195_v36 }
 0x6ae   :  { %v1583_v38 = vpop.f32.mrf.mxu1 }
 0x6af   :  { %v1587_v39 = vadd.f32 %v1583_v38, %v1514_v37 }
 0x6b0   :  { %v3024_v40 = vpop.f32.mrf.mxu1 }
 0x6b1   :  { %3196 = vtanh.f32 %v1587_v39 }
 0x6be   :  { %v3197_v41 = vpop.eup %3196 }
 0x6bf   :  { %1912 = vst [vmem:[%s4498_s7 + $0x30] sm:$0xff] %v3197_v41  ;;  %3058 = vmatmul.mubr.f32.vlgmr.msra.gmra.mxu0 %v3197_v41 }
 0x6c0   :  { %3096 = vmatpush3.msra.mxu0 %v4002_v13  ;;  %3127 = vmatprep.mubr.msk.f32.mxu0 %vm3324_vm0, %v3323_v0 }
 0x6c1   :  { %3097 = vmatprep.subr.mxu0 %v3323_v0 }
 0x6c2   :  { %3098 = vmatpush3.msra.mxu0 %v4008_v14 }
 0x6c3   :  { %3099 = vmatprep.subr.mxu0 %v3323_v0 }
 0x6c4   :  { %3100 = vmatpush3.msra.mxu0 %v4012_v15 }
 0x6c5   :  { %3101 = vmatprep.subr.mxu0 %v3323_v0 }
 0x6c6   :  { %3102 = vmatpush3.msra.mxu0 %v4016_v16 }
 0x6c7   :  { %3103 = vmatprep.subr.mxu0 %v3323_v0 }
 0x6c8   :  { %3104 = vmatpush3.msra.mxu0 %v4020_v17 }
 0x6c9   :  { %3105 = vmatprep.subr.mxu0 %v3323_v0 }
 0x6ca   :  { %3106 = vmatpush3.msra.mxu0 %v4024_v18 }
 0x6cb   :  { %3107 = vmatprep.subr.mxu0 %v3323_v0 }
 0x6cc   :  { %3108 = vmatpush3.msra.mxu0 %v4028_v19 }
 0x6cd   :  { %3109 = vmatprep.subr.mxu0 %v3323_v0 }
 0x6ce   :  { %3110 = vmatpush3.msra.mxu0 %v4032_v20  ;;  %v1732_v13 = vpop.f32.mrf.mxu1 }
 0x6cf   :  { %3111 = vmatprep.subr.mxu0 %v3323_v0  ;;  %v1733_v19 = vadd.f32 %v4323_v3, %v1732_v13 }
 0x6d0   :  { %3112 = vmatpush3.msra.mxu0 %v4036_v21  ;;  %v3094_v14 = vpop.f32.mrf.mxu1 }
 0x6d1   :  { %3113 = vmatprep.subr.mxu0 %v3323_v0 }
 0x6d2   :  { %3114 = vmatpush3.msra.mxu0 %v4040_v22 }
 0x6d3   :  { %3115 = vmatprep.subr.mxu0 %v3323_v0 }
 0x6d4   :  { %3116 = vmatpush3.msra.mxu0 %v4044_v23 }
 0x6d5   :  { %3117 = vmatprep.subr.mxu0 %v3323_v0 }
 0x6d6   :  { %3118 = vmatpush3.msra.mxu0 %v4048_v24 }
 0x6d7   :  { %3119 = vmatprep.subr.mxu0 %v3323_v0 }
 0x6d8   :  { %3120 = vmatpush3.msra.mxu0 %v4052_v25 }
 0x6d9   :  { %3121 = vmatprep.subr.mxu0 %v3323_v0 }
 0x6da   :  { %3122 = vmatpush3.msra.mxu0 %v4056_v26 }
 0x6db   :  { %3123 = vmatprep.subr.mxu0 %v3323_v0 }
 0x6dc   :  { %3124 = vmatpush3.msra.mxu0 %v4060_v27 }
 0x6dd   :  { %3125 = vmatprep.subr.mxu0 %v3323_v0 }
 0x6de   :  { %3126 = vmatpush3.msra.mxu0 %v4064_v28 }
 0x6df   :  { %3128 = vmatmul.mubr.f32.vlgmr.msra.gmra.mxu0 %v3197_v41 }
 0x77f   :  { %v1657_v15 = vpop.f32.mrf.mxu0 }
 0x780   :  { %v1658_v16 = vadd.f32 %v4436_v32, %v1657_v15 }
 0x781   :  { %v3059_v17 = vpop.f32.mrf.mxu0 }
 0x782   :  { %3198 = vtanh.f32 %v1658_v16 }
 0x78f   :  { %v3199_v18 = vpop.eup %3198 }
 0x790   :  { %1913 = vst [vmem:[%s4497_s6 + $0x30] sm:$0xff] %v3199_v18 }
 0x79f   :  { %v1802_v20 = vpop.f32.mrf.mxu0 }
 0x7a0   :  { %v1806_v21 = vadd.f32 %v1802_v20, %v1733_v19 }
 0x7a1   :  { %v3129_v0 = vpop.f32.mrf.mxu0 }
 0x7a2   :  { %3200 = vtanh.f32 %v1806_v21 }
 0x7af   :  { %v3201_v22 = vpop.eup %3200 }
 0x7b0   :  { %1915 = vst [vmem:[%s4498_s7 + $0x38] sm:$0xff] %v3201_v22  ;;  %3163 = vmatmul.mubr.f32.vlgmr.msra.gmra.mxu1 %v3201_v22 }
 0x870   :  { %v1876_v23 = vpop.f32.mrf.mxu1 }
 0x871   :  { %v1877_v24 = vadd.f32 %v4436_v32, %v1876_v23 }
 0x872   :  { %v3164_v25 = vpop.f32.mrf.mxu1 }
 0x873   :  { %3202 = vtanh.f32 %v1877_v24 }
 0x880   :  { %v3203_v26 = vpop.eup %3202 }
 0x881   :  { %1916 = vst [vmem:[%s4497_s6 + $0x38] sm:$0xff] %v3203_v26 }
 0x882   :  { %1892 = vsyncpa [#allocation4], 1 }
 0x883   :  { %1893 = vsyncpa [#allocation6], 1 }

</bundles_post_ra>
